<compile_context>
chip_gen: v7x
topology: tpu7x:2x2x1
jax: 0.10.0
libtpu: 0.0.40
codegen_flags: <defaults>
</compile_context>

<pallas_src>
import jax
import jax.numpy as jnp
from jax import lax
from jax.experimental import pallas as pl
from jax.experimental.pallas import tpu as pltpu

# ---- static sizes implied by the module (Linear(640, 64) with 32 channels) --
H, W = 4, 5              # spatial size of the backbone feature map
HW = H * W               # 20
CIN = 64                 # backbone output channels
CMID = 32                # conv_L_1 output channels
FEAT = 64                # feature_size of the Linear layer (HW * CMID == 640)
DIN = CIN * HW           # 1280 = 10 * 128  (lane-dense contraction dim #1)
DMID = CMID * HW         # 640  = 5  * 128  (lane-dense contraction dim #2)
B_TILE_TARGET = 256      # MXU-filling M on v6e/v7x, fits VMEM on all gens


# ----------------------------- Pallas kernel --------------------------------
def head_kernel(x_ref, wconv_ref, bconv_ref, wlin_ref, blin_ref, out_ref):
    # x_ref    : (bt, 1280) bf16  -- (C,H,W)-flattened backbone features
    # wconv_ref: (1280, 640) bf16 -- conv_L_1 lifted to a dense matrix,
    #                                rows/cols in PyTorch (C,H,W) flatten order
    # bconv_ref: (1, 640)   f32   -- conv bias replicated over spatial positions
    # wlin_ref : (640, 64)  bf16  -- Linear weight, already transposed
    # blin_ref : (1, 64)    f32
    # out_ref  : (bt, 64)   f32
    conv = jnp.dot(x_ref[...], wconv_ref[...],
                   preferred_element_type=jnp.float32)            # (bt, 640)
    conv = jnp.maximum(conv + bconv_ref[...], 0.0)                # bias + ReLU

    y = jnp.dot(conv.astype(jnp.bfloat16), wlin_ref[...],
                preferred_element_type=jnp.float32)               # (bt, 64)
    out_ref[...] = jnp.maximum(y + blin_ref[...], 0.0)            # bias + ReLU


# ------------------------------ tiling policy --------------------------------
def _pick_b_tile(batch, target=B_TILE_TARGET):
    """Largest divisor of `batch` that is <= target (so no batch padding),
    preferring >= 2 grid steps when batch > 1 (v7x has 2 TensorCores)."""
    best = 1
    for d in range(1, min(batch, target) + 1):
        if batch % d == 0:
            best = d
    if best == batch and batch > 1:
        for d in range(batch // 2, 0, -1):
            if batch % d == 0:
                best = d
                break
    return best


def image_head_pallas(x_flat, wconv, bconv, wlin, blin):
    """x_flat: (B, 1280) bf16 (PyTorch-order flatten of features) -> (B, 64) f32."""
    batch = x_flat.shape[0]

    b_tile = _pick_b_tile(batch)
    n_blocks = batch // b_tile
    if n_blocks > 64:
        # Pathological batch size (e.g. a large prime): padded fallback so the
        # grid stays short.  Common cases never take this branch.
        b_tile = min(B_TILE_TARGET, batch)
        n_blocks = pl.cdiv(batch, b_tile)
        pad = n_blocks * b_tile - batch
        x_flat = jnp.pad(x_flat, ((0, pad), (0, 0)))
    b_pad = n_blocks * b_tile

    # (n_blocks, b_tile, D) reshapes are free (row-major) and make every block's
    # last two dims equal the full array dims -> legal for any b_tile.
    x3 = x_flat.reshape(n_blocks, b_tile, DIN)

    flops = 2 * b_pad * (DIN * DMID + DMID * FEAT)
    bytes_accessed = (b_pad * DIN * 2 + DIN * DMID * 2 + DMID * FEAT * 2
                      + (DMID + FEAT) * 4 + b_pad * FEAT * 4)

    out = pl.pallas_call(
        head_kernel,
        out_shape=jax.ShapeDtypeStruct((n_blocks, b_tile, FEAT), jnp.float32),
        grid_spec=pltpu.PrefetchScalarGridSpec(
            num_scalar_prefetch=0,
            grid=(n_blocks,),
            in_specs=[
                pl.BlockSpec((None, b_tile, DIN), lambda b: (b, 0, 0)),
                pl.BlockSpec((DIN, DMID), lambda b: (0, 0)),   # constant index:
                pl.BlockSpec((1, DMID), lambda b: (0, 0)),     # fetched once by
                pl.BlockSpec((DMID, FEAT), lambda b: (0, 0)),  # the pipeline
                pl.BlockSpec((1, FEAT), lambda b: (0, 0)),
            ],
            out_specs=pl.BlockSpec((None, b_tile, FEAT), lambda b: (b, 0, 0)),
        ),
        compiler_params=pltpu.CompilerParams(
            dimension_semantics=("parallel",)),
        cost_estimate=pl.CostEstimate(
            flops=flops, transcendentals=0, bytes_accessed=bytes_accessed),
    )(x3, wconv, bconv, wlin, blin)

    return out.reshape(b_pad, FEAT)[:batch]


# ------------------ conv_L_1 lifted to a dense matrix ------------------------
def conv3x3_as_matrix(wc):
    """Lift conv_L_1 (CMID, CIN, 3, 3), padding=1, on a 4x5 map into a dense
    (CIN*H*W, CMID*H*W) matrix M so that, with x flattened in PyTorch (C,H,W)
    order, x @ M equals the (C,H,W)-flattened conv output.  Zero-padding taps
    drop out automatically (their input rows do not exist)."""
    f32 = jnp.float32
    hi = jnp.arange(H)
    wi = jnp.arange(W)
    kk = jnp.arange(3)
    # sel_h[h_in, h_out, kh] = 1 iff h_in == h_out + kh - 1 (and analogously w)
    sel_h = (hi[:, None, None] == (hi[None, :, None] + kk[None, None, :] - 1)).astype(f32)
    sel_w = (wi[:, None, None] == (wi[None, :, None] + kk[None, None, :] - 1)).astype(f32)
    # M[c_in, h_in, w_in, c_out, h_out, w_out]
    m = jnp.einsum("hHa,wWb,OIab->IhwOHW", sel_h, sel_w, wc.astype(f32))
    return m.reshape(CIN * HW, CMID * HW)


# ----------------------- plain-JAX glue (backbone etc.) ---------------------
def _conv_nchw(x, w, b, stride, pad):
    y = lax.conv_general_dilated(
        x, w, window_strides=(stride, stride),
        padding=[(pad, pad), (pad, pad)],
        dimension_numbers=("NCHW", "OIHW", "NCHW"))
    return y + b[None, :, None, None]


def backbone_features(img, p):
    """Stand-in for the frozen VisionNavNet features: (B,3,240,320)->(B,64,4,5)."""
    x = jnp.maximum(_conv_nchw(img, p["w1"], p["b1"], 4, 2), 0.0)   # (B,16,60,80)
    x = jnp.maximum(_conv_nchw(x, p["w2"], p["b2"], 4, 1), 0.0)     # (B,32,15,20)
    x = jnp.maximum(_conv_nchw(x, p["w3"], p["b3"], 2, 1), 0.0)     # (B,64, 8,10)
    B, C, Hh, Ww = x.shape
    x = x.reshape(B, C, Hh // 2, 2, Ww // 2, 2).mean(axis=(3, 5))   # (B,64,4,5)
    return x


def reference_head(feat_nchw, wc, bc, wl, bl):
    """Pure-JAX reference of conv_L_1 + ReLU + flatten + Linear + ReLU.

    Mirrors the kernel's bf16 rounding of inputs / weights / the intermediate
    activation so the comparison isolates the Pallas implementation itself.
    """
    f = feat_nchw.astype(jnp.bfloat16).astype(jnp.float32)
    wc_ = wc.astype(jnp.bfloat16).astype(jnp.float32)
    wl_ = wl.astype(jnp.bfloat16).astype(jnp.float32)
    y = lax.conv_general_dilated(
        f, wc_, (1, 1), [(1, 1), (1, 1)],
        dimension_numbers=("NCHW", "OIHW", "NCHW"))
    y = jnp.maximum(y + bc[None, :, None, None], 0.0)               # (B,32,4,5)
    y = y.astype(jnp.bfloat16).astype(jnp.float32)
    flat = y.reshape(y.shape[0], -1)                                # PyTorch flatten
    return jnp.maximum(flat @ wl_.T + bl, 0.0)                      # (B,64)


def init_params(key):
    ks = jax.random.split(key, 10)
    p = {
        # stand-in backbone
        "w1": jax.random.normal(ks[0], (16, 3, 5, 5), jnp.float32) * 0.1,
        "b1": jax.random.normal(ks[1], (16,), jnp.float32) * 0.01,
        "w2": jax.random.normal(ks[2], (32, 16, 3, 3), jnp.float32) * 0.1,
        "b2": jax.random.normal(ks[3], (32,), jnp.float32) * 0.01,
        "w3": jax.random.normal(ks[4], (64, 32, 3, 3), jnp.float32) * 0.1,
        "b3": jax.random.normal(ks[5], (64,), jnp.float32) * 0.01,
        # ImageModel head (PyTorch layouts)
        "wc": jax.random.normal(ks[6], (CMID, CIN, 3, 3), jnp.float32) * 0.05,
        "bc": jax.random.normal(ks[7], (CMID,), jnp.float32) * 0.01,
        "wl": jax.random.normal(ks[8], (FEAT, HW * CMID), jnp.float32) * 0.05,
        "bl": jax.random.normal(ks[9], (FEAT,), jnp.float32) * 0.01,
    }
    return p


def image_model_forward(img, p):
    feats = backbone_features(img, p)                    # (B, 64, 4, 5)  NCHW
    B = feats.shape[0]

    # Kernel input: PyTorch (C,H,W) flatten of the backbone output.
    # A free reshape — no transpose, no im2col, no pad materialization.
    x_flat = feats.reshape(B, DIN).astype(jnp.bfloat16)               # (B, 1280)

    wconv_big = conv3x3_as_matrix(p["wc"]).astype(jnp.bfloat16)       # (1280, 640)
    bconv_big = jnp.repeat(p["bc"], HW).reshape(1, DMID).astype(jnp.float32)
    wlin_k = p["wl"].T.astype(jnp.bfloat16)                           # (640, 64)
    blin_k = p["bl"].reshape(1, FEAT).astype(jnp.float32)

    out = image_head_pallas(x_flat, wconv_big, bconv_big, wlin_k, blin_k)
    return feats, out


if __name__ == "__main__":
    key = jax.random.PRNGKey(0)
    kp, kimg = jax.random.split(key)
    params = init_params(kp)

    # input consistent with the module docstring: img of shape [B, 3, 240, 320]
    img = jax.random.normal(kimg, (2, 3, 240, 320), jnp.float32)

    feats, out = image_model_forward(img, params)
    out = jax.block_until_ready(out)

    # sanity check against a pure-JAX reference of the ImageModel head
    ref = reference_head(feats, params["wc"], params["bc"],
                         params["wl"], params["bl"])
    assert out.shape == (2, FEAT)
    assert jnp.allclose(out, ref, atol=2e-2, rtol=2e-2), \
        float(jnp.max(jnp.abs(out - ref)))

    print("KERNEL_OK")
</pallas_src>

<mosaic_0001>
module attributes {stable_mosaic.version = 11 : i64} {
  func.func @head_kernel(%arg0: i32, %arg1: memref<1x1x1280xbf16, #tpu.memory_space<vmem>>, %arg2: memref<1280x640xbf16, #tpu.memory_space<vmem>>, %arg3: memref<1x640xf32, #tpu.memory_space<vmem>>, %arg4: memref<640x64xbf16, #tpu.memory_space<vmem>>, %arg5: memref<1x64xf32, #tpu.memory_space<vmem>>, %arg6: memref<1x1x64xf32, #tpu.memory_space<vmem>>) attributes {dimension_semantics = [#tpu.dimension_semantics<parallel>], iteration_bounds = array<i64: 2>, scalar_prefetch = 0 : i64, scratch_operands = 0 : i64, tpu.core_type = #tpu.core_type<tc>, window_params = [{transform_indices = @transform_0, window_bounds = array<i64: 1, 1, 1280>}, {pipeline_mode = #tpu.pipeline_mode<synchronous>, transform_indices = @transform_1, window_bounds = array<i64: 1280, 640>}, {pipeline_mode = #tpu.pipeline_mode<synchronous>, transform_indices = @transform_2, window_bounds = array<i64: 1, 640>}, {pipeline_mode = #tpu.pipeline_mode<synchronous>, transform_indices = @transform_3, window_bounds = array<i64: 640, 64>}, {pipeline_mode = #tpu.pipeline_mode<synchronous>, transform_indices = @transform_4, window_bounds = array<i64: 1, 64>}, {transform_indices = @transform_5, window_bounds = array<i64: 1, 1, 64>}]} {
    %c0 = arith.constant 0 : index
    %c0_0 = arith.constant 0 : index
    %c0_1 = arith.constant 0 : index
    %0 = vector.load %arg1[%c0, %c0_0, %c0_1] : memref<1x1x1280xbf16, #tpu.memory_space<vmem>>, vector<1x1x1280xbf16>
    %1 = vector.shape_cast %0 : vector<1x1x1280xbf16> to vector<1x1280xbf16>
    %c0_2 = arith.constant 0 : index
    %c0_3 = arith.constant 0 : index
    %2 = vector.load %arg2[%c0_2, %c0_3] : memref<1280x640xbf16, #tpu.memory_space<vmem>>, vector<1280x640xbf16>
    %cst = arith.constant dense<0.000000e+00> : vector<1x640xf32>
    %3 = tpu.matmul %1, %2, %cst {dimension_numbers = #tpu.dot_dimension_numbers<[1], [0], [0], [1], [0, 0, 1, 1], [], []>} : vector<1x1280xbf16>, vector<1280x640xbf16>, vector<1x640xf32> -> vector<1x640xf32>
    %c0_4 = arith.constant 0 : index
    %c0_5 = arith.constant 0 : index
    %4 = vector.load %arg3[%c0_4, %c0_5] : memref<1x640xf32, #tpu.memory_space<vmem>>, vector<1x640xf32>
    %5 = arith.addf %3, %4 : vector<1x640xf32>
    %cst_6 = arith.constant 0.000000e+00 : f32
    %6 = vector.broadcast %cst_6 : f32 to vector<1x640xf32>
    %7 = arith.maximumf %5, %6 : vector<1x640xf32>
    %8 = arith.truncf %7 : vector<1x640xf32> to vector<1x640xbf16>
    %c0_7 = arith.constant 0 : index
    %c0_8 = arith.constant 0 : index
    %9 = vector.load %arg4[%c0_7, %c0_8] : memref<640x64xbf16, #tpu.memory_space<vmem>>, vector<640x64xbf16>
    %cst_9 = arith.constant dense<0.000000e+00> : vector<1x64xf32>
    %10 = tpu.matmul %8, %9, %cst_9 {dimension_numbers = #tpu.dot_dimension_numbers<[1], [0], [0], [1], [0, 0, 1, 1], [], []>} : vector<1x640xbf16>, vector<640x64xbf16>, vector<1x64xf32> -> vector<1x64xf32>
    %c0_10 = arith.constant 0 : index
    %c0_11 = arith.constant 0 : index
    %11 = vector.load %arg5[%c0_10, %c0_11] : memref<1x64xf32, #tpu.memory_space<vmem>>, vector<1x64xf32>
    %12 = arith.addf %10, %11 : vector<1x64xf32>
    %cst_12 = arith.constant 0.000000e+00 : f32
    %13 = vector.broadcast %cst_12 : f32 to vector<1x64xf32>
    %14 = arith.maximumf %12, %13 : vector<1x64xf32>
    %c0_13 = arith.constant 0 : index
    %c0_14 = arith.constant 0 : index
    %c0_15 = arith.constant 0 : index
    %15 = vector.load %arg6[%c0_13, %c0_14, %c0_15] : memref<1x1x64xf32, #tpu.memory_space<vmem>>, vector<1x1x64xf32>
    %16 = vector.shape_cast %15 : vector<1x1x64xf32> to vector<1x64xf32>
    %17 = vector.shape_cast %14 : vector<1x64xf32> to vector<1x1x64xf32>
    tpu.vector_store %arg6[%c0_13, %c0_14, %c0_15], %17 {strides = array<i32>} : memref<1x1x64xf32, #tpu.memory_space<vmem>>, vector<1x1x64xf32>,
    return
  }
  func.func @transform_0(%arg0: i32) -> (i32, i32, i32) {
    %c0_i32 = arith.constant 0 : i32
    %c0_i32_0 = arith.constant 0 : i32
    %c0_i32_1 = arith.constant 0 : i32
    return %arg0, %c0_i32, %c0_i32_0 : i32, i32, i32
  }
  func.func @transform_1(%arg0: i32) -> (i32, i32) {
    %c0_i32 = arith.constant 0 : i32
    %c0_i32_0 = arith.constant 0 : i32
    %c0_i32_1 = arith.constant 0 : i32
    return %c0_i32, %c0_i32_0 : i32, i32
  }
  func.func @transform_2(%arg0: i32) -> (i32, i32) {
    %c0_i32 = arith.constant 0 : i32
    %c0_i32_0 = arith.constant 0 : i32
    %c0_i32_1 = arith.constant 0 : i32
    return %c0_i32, %c0_i32_0 : i32, i32
  }
  func.func @transform_3(%arg0: i32) -> (i32, i32) {
    %c0_i32 = arith.constant 0 : i32
    %c0_i32_0 = arith.constant 0 : i32
    %c0_i32_1 = arith.constant 0 : i32
    return %c0_i32, %c0_i32_0 : i32, i32
  }
  func.func @transform_4(%arg0: i32) -> (i32, i32) {
    %c0_i32 = arith.constant 0 : i32
    %c0_i32_0 = arith.constant 0 : i32
    %c0_i32_1 = arith.constant 0 : i32
    return %c0_i32, %c0_i32_0 : i32, i32
  }
  func.func @transform_5(%arg0: i32) -> (i32, i32, i32) {
    %c0_i32 = arith.constant 0 : i32
    %c0_i32_0 = arith.constant 0 : i32
    %c0_i32_1 = arith.constant 0 : i32
    return %arg0, %c0_i32, %c0_i32_0 : i32, i32, i32
  }
}

</mosaic_0001>

<bundles_post_ra>
// kernel: tpu_custom_call.1
= control target key start
LH: loop header
LB: loop body
LE: loop exit
PB: predicated region body
PF: predicated region fallthrough
CT: control target
= control target key end

     0   :  { %10 = vsyncpa [#allocation3], 0  ;;  %s6057_s0 = inlined_call_operand.vmem [shape: bf16[2,1,1280], index: 0, kind: input, shape index: {}]   ;;  %s6058_s1 = inlined_call_operand.hbm [shape: bf16[1280,640], index: 1, kind: input, shape index: {}]   ;;  %s6059_s2 = inlined_call_operand.hbm [shape: f32[1,640], index: 2, kind: input, shape index: {}]   ;;  %s6060_s3 = inlined_call_operand.vmem [shape: bf16[640,64], index: 3, kind: input, shape index: {}]   ;;  %s6061_s4 = inlined_call_operand.hbm [shape: f32[1,64], index: 4, kind: input, shape index: {}]   ;;  %s6062_s5 = inlined_call_operand.hbm [shape: f32[2,1,64], index: 5, kind: output, shape index: {}]  }
   0x1   :  { %11 = vsyncpa [#allocation6], 0 }
   0x2   :  { %12 = vsyncpa [#allocation4], 0 }
   0x3   :  { %14 = vsyncpa [#allocation4 + $0x1], 0  ;;  %s5640_s18 = smov 0   ;;  %s5642_s19 = smov 0  }
   0x4   :  { %s5644_s20 = smov 0   ;;  %s5646_s21 = smov 0  }
   0x5 LB: > { %s5661_s22 = sadd.s32 4294967295, %s5599_s21   ;;  %s4095_s23 = sadd.s32 4294967294, %s5599_s21   ;;  %s5599_s21 = sphi %s5646_s21, %s6081_s21   ;;  %s5595_s20 = sphi %s5644_s20, %s6080_s20   ;;  %s5591_s19 = sphi %s5642_s19, %s6079_s19   ;;  %s5587_s18 = sphi %s5640_s18, %s6078_s18  }
   0x6   : > { %s5665_s24 = sadd.s32 1, %s5599_s21   ;;  %s137_s25 = sadd.s32 1, %s5595_s20 }
   0x7   : > { %s134_s26 = ssub.s32 %s5599_s21, %s5665_s24  ;;  %p147_p0 = scmp.ne.s32.totalorder %s5595_s20, %s5591_s19 }
   0x8   : > { %p135_p1 = scmp.eq.s32.totalorder %s134_s26, 0  ;;  %p148_p2 = scmp.eq.s32.totalorder %s5661_s22, 1 }
   0x9   : > { %p153_p3 = scmp.ne.s32.totalorder %s5591_s19, %s5587_s18  ;;  %p154_p4 = scmp.eq.s32.totalorder %s4095_s23, 1 }
   0xa   : > { %s5676_s27 = scalar_select %p135_p1, %s5595_s20, %s137_s25  }
   0xb   : > { %p5678_p5 = por %p148_p2, %p147_p0  ;;  %p5682_p6 = por %p154_p4, %p153_p3 }
   0xc   : > { %p4096_p7 = scmp.ge.s32.totalorder %s5599_s21, 1  ;;  %p161_p8 = scmp.lt.s32.totalorder %s5599_s21, 3 }
   0xd   : > { %s6066_s28 = scalar_select %p5678_p5, 1, 0 }
   0xe   : > { %s6067_s29 = scalar_select %p5682_p6, 1, 0 }
   0xf   : > { %p6063_p9 = scmp.eq.s32.totalorder %s5661_s22, 0  ;;  %p5689_p10 = pnand %p4096_p7, %p161_p8 }
  0x10   : > { %s5601_s6 = smov [#allocation5]   ;;  %s5602_s8 = smov [#allocation2]  }
  0x11   : > { %s6068_s30 = scalar_select %p5689_p10, 1, 0 }
  0x12   : > { %s187_s7 = sshll.u32 %s5601_s6, 4  ;;  %p4783_p11 = pneg %p5689_p10  ;;  %s188_s7 = int_to_ptr.vmem [resolvable:$true] %s187_s7 }
  0x13   : > { %s173_s9 = sshll.u32 %s5602_s8, 4  ;;  %s5603_s11 = smov [#allocation7]   ;;  %s5701_s9 = int_to_ptr.vmem [resolvable:$true] %s173_s9 }
  0x14   : > { %p5697_p12 = pnand %p6063_p9, %p4783_p11  ;;  %s5703_s12 = sshll.u32 %s5603_s11, 4  ;;  %s202_s12 = int_to_ptr.vmem [resolvable:$true] %s5703_s12 }
  0x15   : > { %s5445_s15 = scalar_lea.hbm %s6059_s2, 80 }
  0x16   : > { %p5446_p13 = scmp.ne.s32.totalorder %s6059_s2, %s5445_s15  ;;  %p5713_p0 = pneg %p5697_p12 }
  0x17   : > { %p5452_p3 = scmp.lt.u32.totalorder %s5445_s15, %s6059_s2 }
  0x18   : > { %p5448_p1 = pnand %p5713_p0, %p5446_p13 }
  0x1a   : > { %p5449_p2 = pneg %p5448_p1 }
  0x1c   : > { %p5454_p4 = pnand %p5452_p3, %p5449_p2 }
  0x1e   : > { %5457 = shalt.err (!%p5454_p4)
}
  0x1f   : > { %s5458_s6 = scalar_lea.vmem %s188_s7, 80  ;;  %s5465_s8 = scalar_lea.vmem %s188_s7, 96 }
  0x20   : > { %p5459_p7 = scmp.ne.s32.totalorder %s188_s7, %s5458_s6  ;;  %p5466_p9 = scmp.lt.s32.totalorder %s188_s7, %s188_s7 }
  0x21   : > { %p5467_p6 = scmp.lt.s32.totalorder %s5465_s8, %s5458_s6 }
  0x22   : > { %p5461_p8 = pnand %p5459_p7, %p5713_p0 }
  0x23   : > { %p5468_p5 = por %p5467_p6, %p5466_p9 }
  0x24   : > { %p5462_p11 = pneg %p5461_p8 }
  0x26   : > { %p5469_p10 = pnand %p5468_p5, %p5462_p11 }
  0x28   : > { %5472 = shalt.err (!%p5469_p10)
}
  0x29   : > { %4789 = dma.hbm_to_vmem [thread:$0]  (!%p5697_p12), %s6059_s2, 80, %s188_s7, [#allocation6]  }
  0x2a   : > { %s5473_s16 = scalar_lea.hbm %s6058_s1, 51200 }
  0x2b   : > { %p5474_p13 = scmp.ne.s32.totalorder %s6058_s1, %s5473_s16  ;;  %p5480_p5 = scmp.lt.u32.totalorder %s5473_s16, %s6058_s1 }
  0x2d   : > { %p5476_p1 = pnand %p5474_p13, %p5713_p0 }
  0x2f   : > { %p5477_p6 = pneg %p5476_p1 }
  0x31   : > { %p5482_p9 = pnand %p5480_p5, %p5477_p6 }
  0x33   : > { %5485 = shalt.err (!%p5482_p9)
}
  0x34   : > { %s5486_s7 = scalar_lea.vmem %s5701_s9, 51200  ;;  %p5494_p4 = scmp.lt.s32.totalorder %s5701_s9, %s5701_s9 }
  0x35   : > { %p5487_p10 = scmp.ne.s32.totalorder %s5701_s9, %s5486_s7  ;;  %p5495_p7 = scmp.lt.s32.totalorder %s5486_s7, %s5486_s7 }
  0x37   : > { %p5489_p2 = pnand %p5487_p10, %p5713_p0  ;;  %p5496_p8 = por %p5495_p7, %p5494_p4 }
  0x39   : > { %p5490_p3 = pneg %p5489_p2 }
  0x3b   : > { %p5497_p11 = pnand %p5496_p8, %p5490_p3 }
  0x3d   : > { %5500 = shalt.err (!%p5497_p11)
}
  0x3e   : > { %s5604_s8 = smov 320   ;;  %s5605_s11 = smov 20  }
  0x3f   : > { %4786 = dma.hbm_to_vmem [thread:$0]  (!%p5697_p12), %s6058_s1, 51200, %s5701_s9, [#allocation3], %s5604_s8, %s5604_s8, %s5605_s11  }
  0x40   : > { %s5501_s17 = scalar_lea.hbm %s6061_s4, 16 }
  0x41   : > { %p5502_p13 = scmp.ne.s32.totalorder %s6061_s4, %s5501_s17  ;;  %p5508_p5 = scmp.lt.u32.totalorder %s5501_s17, %s6061_s4 }
  0x43   : > { %p5504_p1 = pnand %p5502_p13, %p5713_p0 }
  0x45   : > { %p5505_p6 = pneg %p5504_p1 }
  0x47   : > { %p5510_p9 = pnand %p5508_p5, %p5505_p6 }
  0x49   : > { %5513 = shalt.err (!%p5510_p9)
}
  0x4a   : > { %s5514_s13 = scalar_lea.vmem %s202_s12, 16  ;;  %s5521_s9 = scalar_lea.vmem %s202_s12, 32 }
  0x4b   : > { %p5515_p10 = scmp.ne.s32.totalorder %s202_s12, %s5514_s13  ;;  %p5522_p4 = scmp.lt.s32.totalorder %s202_s12, %s202_s12 }
  0x4c   : > { %p5523_p7 = scmp.lt.s32.totalorder %s5521_s9, %s5514_s13 }
  0x4d   : > { %p5517_p2 = pnand %p5515_p10, %p5713_p0 }
  0x4e   : > { %p5524_p8 = por %p5523_p7, %p5522_p4 }
  0x4f   : > { %p5518_p3 = pneg %p5517_p2 }
  0x51   : > { %p5525_p11 = pnand %p5524_p8, %p5518_p3 }
  0x53   : > { %5528 = shalt.err (!%p5525_p11)
}
  0x54   : > { %4792 = dma.hbm_to_vmem [thread:$0]  (!%p5697_p12), %s6061_s4, 16, %s202_s12, [#allocation6]  }
  0x55   : > { %p6071_p13 = scmp.ne.s32.totalorder %s6068_s30, 0 }
  0x56   : > { %p6072_p1 = scmp.eq.s32.totalorder (!%p6071_p13), %s5661_s22, 0 }
  0x57   : > { %221 = sbr.rel (%p6071_p13) target bundleno = 967 (0x3c7), region = 40 }
  0x5e   : > { %5574 = dma.done.wait (%p6072_p1), [#allocation3], 51200   ;;  %p6073_p0 = pmov %p6072_p1 }
  0x60   : > { %5576 = vsyncadd (%p6073_p0), [#allocation3], 4294916096  ;;  %p6074_p6 = pmov %p6073_p0 }
  0x61   : > { %p6075_p5 = pmov %p6073_p0 }
  0x62   : > { %5578 = dma.done.wait (%p6074_p6), [#allocation6], 96  }
  0x63   : > { %5580 = vsyncadd (%p6075_p5), [#allocation6], 4294967200  ;;  %v4844_v0 = vld [vmem:[#allocation2 + $0x4] ss:$20 sps:$4 sm:$0xff]   ;;  %v4846_v1 = vld [vmem:[#allocation2 + $0xc] ss:$20 sps:$4 sm:$0xff]   ;;  %v749_v38 = vlaneseq }
  0x64   : > { %2932 = vmatprep.subr.bf16.mxu0 %v4844_v0  ;;  %v4848_v2 = vld [vmem:[#allocation2] ss:$20 sps:$4 sm:$0xff]   ;;  %v4849_v3 = vld [vmem:[#allocation2 + $0x8] ss:$20 sps:$4 sm:$0xff]   ;;  %3137 = vmatprep.subr.bf16.mxu1 %v4846_v1  ;;  %v4855_v7 = vld [vmem:[#allocation2 + $0x30] ss:$20 sps:$4 sm:$0xff]  }
  0x65   : > { %v4850_v4 = vld [vmem:[#allocation2 + $0x2c] ss:$20 sps:$4 sm:$0xff]   ;;  %2933 = vmatpush1.bf16.msra.mxu0 %v4848_v2  ;;  %3138 = vmatpush1.bf16.msra.mxu1 %v4849_v3  ;;  %v4852_v5 = vld [vmem:[#allocation2 + $0x34] ss:$20 sps:$4 sm:$0xff]   ;;  %v4858_v9 = vld [vmem:[#allocation2 + $0x5c] ss:$20 sps:$4 sm:$0xff]  }
  0x66   : > { %v4854_v6 = vld [vmem:[#allocation2 + $0x28] ss:$20 sps:$4 sm:$0xff]   ;;  %2934 = vmatprep.subr.bf16.mxu0 %v4850_v4  ;;  %3139 = vmatprep.subr.bf16.mxu1 %v4852_v5  ;;  %v4860_v10 = vld [vmem:[#allocation2 + $0x50] ss:$20 sps:$4 sm:$0xff]   ;;  %v4861_v11 = vld [vmem:[#allocation2 + $0x58] ss:$20 sps:$4 sm:$0xff]  }
  0x67   : > { %v4856_v8 = vld [vmem:[#allocation2 + $0x54] ss:$20 sps:$4 sm:$0xff]   ;;  %v4862_v12 = vld [vmem:[#allocation2 + $0x7c] ss:$20 sps:$4 sm:$0xff]   ;;  %v4864_v13 = vld [vmem:[#allocation2 + $0x84] ss:$20 sps:$4 sm:$0xff]  }
  0x68   : > { %v4866_v14 = vld [vmem:[#allocation2 + $0x78] ss:$20 sps:$4 sm:$0xff]   ;;  %v4867_v15 = vld [vmem:[#allocation2 + $0x80] ss:$20 sps:$4 sm:$0xff]   ;;  %v4873_v19 = vld [vmem:[#allocation2 + $0xa8] ss:$20 sps:$4 sm:$0xff]  }
  0x69   : > { %2935 = vmatpush1.bf16.msra.mxu0 %v4854_v6  ;;  %3140 = vmatpush1.bf16.msra.mxu1 %v4855_v7  ;;  %v4868_v16 = vld [vmem:[#allocation2 + $0xa4] ss:$20 sps:$4 sm:$0xff]   ;;  %v4870_v17 = vld [vmem:[#allocation2 + $0xac] ss:$20 sps:$4 sm:$0xff]   ;;  %v4876_v21 = vld [vmem:[#allocation2 + $0xd4] ss:$20 sps:$4 sm:$0xff]  }
  0x6a   : > { %2936 = vmatprep.subr.bf16.mxu0 %v4856_v8  ;;  %3141 = vmatprep.subr.bf16.mxu1 %v4858_v9  ;;  %v4872_v18 = vld [vmem:[#allocation2 + $0xa0] ss:$20 sps:$4 sm:$0xff]   ;;  %v4878_v22 = vld [vmem:[#allocation2 + $0xc8] ss:$20 sps:$4 sm:$0xff]   ;;  %v4879_v23 = vld [vmem:[#allocation2 + $0xd0] ss:$20 sps:$4 sm:$0xff]  }
  0x6b   : > { %v4874_v20 = vld [vmem:[#allocation2 + $0xcc] ss:$20 sps:$4 sm:$0xff]   ;;  %v4880_v24 = vld [vmem:[#allocation2 + $0xf4] ss:$20 sps:$4 sm:$0xff]   ;;  %v4882_v25 = vld [vmem:[#allocation2 + $0xfc] ss:$20 sps:$4 sm:$0xff]  }
  0x6c   : > { %v4884_v26 = vld [vmem:[#allocation2 + $0xf0] ss:$20 sps:$4 sm:$0xff]   ;;  %v4885_v27 = vld [vmem:[#allocation2 + $0xf8] ss:$20 sps:$4 sm:$0xff]   ;;  %p255_p12 = scmp.lt.s32.totalorder %s5661_s22, 1  ;;  %v5783_v43 = vshrl.u32 %v749_v38, 7 }
  0x6d   : > { %2937 = vmatpush1.bf16.msra.mxu0 %v4860_v10  ;;  %3142 = vmatpush1.bf16.msra.mxu1 %v4861_v11  ;;  %v4886_v28 = vld [vmem:[#allocation2 + $0x11c] ss:$20 sps:$4 sm:$0xff]   ;;  %v4888_v29 = vld [vmem:[#allocation2 + $0x124] ss:$20 sps:$4 sm:$0xff]   ;;  %v4891_v31 = vld [vmem:[#allocation2 + $0x120] ss:$20 sps:$4 sm:$0xff]  }
  0x6e   : > { %2938 = vmatprep.subr.bf16.mxu0 %v4862_v12  ;;  %3143 = vmatprep.subr.bf16.mxu1 %v4864_v13  ;;  %v4890_v30 = vld [vmem:[#allocation2 + $0x118] ss:$20 sps:$4 sm:$0xff]   ;;  %v4896_v34 = vld [vmem:[#allocation2 + $0x140] ss:$20 sps:$4 sm:$0xff]   ;;  %v4897_v35 = vld [vmem:[#allocation2 + $0x148] ss:$20 sps:$4 sm:$0xff]  }
  0x6f   : > { %v4892_v32 = vld [vmem:[#allocation2 + $0x144] ss:$20 sps:$4 sm:$0xff]   ;;  %v4894_v33 = vld [vmem:[#allocation2 + $0x14c] ss:$20 sps:$4 sm:$0xff]   ;;  %s256_s30 = scalar_select %p255_p12, %s5661_s22, 1  ;;  %vm5608_vm0 = vmmov 0  }
  0x70   : > { %v5606_v36 = vmov 1966171168   ;;  %v4898_v39 = vld [vmem:[#allocation2 + $0x16c] ss:$20 sps:$4 sm:$0xff]   ;;  %v4900_v40 = vld [vmem:[#allocation2 + $0x174] ss:$20 sps:$4 sm:$0xff]  }
  0x71   : > { %2939 = vmatpush1.bf16.msra.mxu0 %v4866_v14  ;;  %3144 = vmatpush1.bf16.msra.mxu1 %v4867_v15  ;;  %v747_v37 = vunpack.c.l.s4 %v5606_v36  ;;  %v4902_v41 = vld [vmem:[#allocation2 + $0x168] ss:$20 sps:$4 sm:$0xff]   ;;  %s4768_s10 = smul.u32 10, %s256_s30  ;;  %v4903_v44 = vld [vmem:[#allocation2 + $0x170] ss:$20 sps:$4 sm:$0xff]   ;;  %s253_s15 = sand.u32 1, %s5591_s19  }
  0x72   : > { %2940 = vmatprep.subr.bf16.mxu0 %v4868_v16  ;;  %3145 = vmatprep.subr.bf16.mxu1 %v4870_v17  ;;  %v4904_v45 = vld [vmem:[#allocation2 + $0x194] ss:$20 sps:$4 sm:$0xff]   ;;  %v4906_v46 = vld [vmem:[#allocation2 + $0x19c] ss:$20 sps:$4 sm:$0xff]   ;;  %v4909_v48 = vld [vmem:[#allocation2 + $0x198] ss:$20 sps:$4 sm:$0xff]  }
  0x73   : > { %v748_v42 = vunpack.c.0.s8 %v747_v37  ;;  %v4908_v47 = vld [vmem:[#allocation2 + $0x190] ss:$20 sps:$4 sm:$0xff]   ;;  %s5788_s14 = scalar_lea.vmem %s6057_s0, %s4768_s10  ;;  %v4914_v53 = vld [vmem:[#allocation2 + $0x1b8] ss:$20 sps:$4 sm:$0xff]   ;;  %v4915_v55 = vld [vmem:[#allocation2 + $0x1c0] ss:$20 sps:$4 sm:$0xff]  }
  0x74   : > { %v4910_v50 = vld [vmem:[#allocation2 + $0x1bc] ss:$20 sps:$4 sm:$0xff]   ;;  %v4912_v51 = vld [vmem:[#allocation2 + $0x1c4] ss:$20 sps:$4 sm:$0xff]   ;;  %v5794_v52 = vld [vmem:[%s5788_s14] sm:$0xff]  ;;  %s4546_s16 = sshll.u32 %s5661_s22, 4 }
  0x75   : > { %2941 = vmatpush1.bf16.msra.mxu0 %v4872_v18  ;;  %3146 = vmatpush1.bf16.msra.mxu1 %v4873_v19  ;;  %v5791_v49 = vsub.s32 %v748_v42, %v5783_v43  ;;  %v4916_v56 = vld [vmem:[#allocation2 + $0x1e4] ss:$20 sps:$4 sm:$0xff]   ;;  %v4918_v57 = vld [vmem:[#allocation2 + $0x1ec] ss:$20 sps:$4 sm:$0xff]   ;;  %v4921_v61 = vld [vmem:[#allocation2 + $0x1e8] ss:$20 sps:$4 sm:$0xff]   ;;  %s6015_s7 = scalar_lea.hbm %s6062_s5, %s4546_s16 }
  0x76   : > { %2942 = vmatprep.subr.bf16.mxu0 %v4874_v20  ;;  %3147 = vmatprep.subr.bf16.mxu1 %v4876_v21  ;;  %v4920_v59 = vld [vmem:[#allocation2 + $0x1e0] ss:$20 sps:$4 sm:$0xff]   ;;  %v4926_v0 = vld [vmem:[#allocation2 + $0x208] ss:$20 sps:$4 sm:$0xff]   ;;  %v4927_v1 = vld [vmem:[#allocation2 + $0x210] ss:$20 sps:$4 sm:$0xff]  }
  0x77   : > { %v752_v54 = vrot.slane %v5794_v52, %v5791_v49  ;;  %v4922_v62 = vld [vmem:[#allocation2 + $0x20c] ss:$20 sps:$4 sm:$0xff]   ;;  %v4924_v63 = vld [vmem:[#allocation2 + $0x214] ss:$20 sps:$4 sm:$0xff]   ;;  %v4930_v3 = vld [vmem:[#allocation2 + $0x23c] ss:$20 sps:$4 sm:$0xff]  }
  0x78   : > { %v4928_v2 = vld [vmem:[#allocation2 + $0x234] ss:$20 sps:$4 sm:$0xff]   ;;  %v4932_v4 = vld [vmem:[#allocation2 + $0x230] ss:$20 sps:$4 sm:$0xff]   ;;  %v4933_v5 = vld [vmem:[#allocation2 + $0x238] ss:$20 sps:$4 sm:$0xff]  }
  0x79   : > { %2943 = vmatpush1.bf16.msra.mxu0 %v4878_v22  ;;  %3148 = vmatpush1.bf16.msra.mxu1 %v4879_v23  ;;  %v760_v58 = vcombine.high %v752_v54, %v752_v54  ;;  %v4934_v6 = vld [vmem:[#allocation2 + $0x25c] ss:$20 sps:$4 sm:$0xff]   ;;  %v4936_v7 = vld [vmem:[#allocation2 + $0x264] ss:$20 sps:$4 sm:$0xff]   ;;  %v4939_v9 = vld [vmem:[#allocation2 + $0x260] ss:$20 sps:$4 sm:$0xff]   ;;  %v5804_v13 = vrot.slane %v752_v54, %v5791_v49 }
  0x7a   : > { %2944 = vmatprep.subr.bf16.mxu0 %v4880_v24  ;;  %3149 = vmatprep.subr.bf16.mxu1 %v4882_v25  ;;  %v4938_v8 = vld [vmem:[#allocation2 + $0x258] ss:$20 sps:$4 sm:$0xff]   ;;  %v4940_v12 = vld [vmem:[#allocation2 + $0x280] ss:$20 sps:$4 sm:$0xff]   ;;  %v4943_v14 = vld [vmem:[#allocation2 + $0x288] ss:$20 sps:$4 sm:$0xff]  }
  0x7b   : > { %v5799_v60 = vrot.slane %v760_v58, %v5791_v49  ;;  %v4942_v10 = vld [vmem:[#allocation2 + $0x284] ss:$20 sps:$4 sm:$0xff]   ;;  %v4945_v11 = vld [vmem:[#allocation2 + $0x28c] ss:$20 sps:$4 sm:$0xff]   ;;  %v4951_v16 = vld [vmem:[#allocation2 + $0x2b4] ss:$20 sps:$4 sm:$0xff]  }
  0x7c   : > { %v4948_v15 = vld [vmem:[#allocation2 + $0x2ac] ss:$20 sps:$4 sm:$0xff]   ;;  %v4946_v18 = vld [vmem:[#allocation2 + $0x2a8] ss:$20 sps:$4 sm:$0xff]   ;;  %v4949_v19 = vld [vmem:[#allocation2 + $0x2b0] ss:$20 sps:$4 sm:$0xff]  }
  0x7d   : > { %2945 = vmatpush1.bf16.msra.mxu0 %v4884_v26  ;;  %3150 = vmatpush1.bf16.msra.mxu1 %v4885_v27  ;;  %v5808_v17 = vcombine.high %v5799_v60, %v5799_v60  ;;  %v4954_v20 = vld [vmem:[#allocation2 + $0x2d4] ss:$20 sps:$4 sm:$0xff]   ;;  %v4957_v21 = vld [vmem:[#allocation2 + $0x2dc] ss:$20 sps:$4 sm:$0xff]   ;;  %v4955_v23 = vld [vmem:[#allocation2 + $0x2d8] ss:$20 sps:$4 sm:$0xff]  }
  0x7e   : > { %2946 = vmatprep.subr.bf16.mxu0 %v4886_v28  ;;  %3151 = vmatprep.subr.bf16.mxu1 %v4888_v29  ;;  %v4952_v22 = vld [vmem:[#allocation2 + $0x2d0] ss:$20 sps:$4 sm:$0xff]   ;;  %v4958_v26 = vld [vmem:[#allocation2 + $0x2f8] ss:$20 sps:$4 sm:$0xff]   ;;  %v4961_v27 = vld [vmem:[#allocation2 + $0x300] ss:$20 sps:$4 sm:$0xff]  }
  0x7f   : > { %2964 = vmatprep.mubr.bf16.mxu0 %v5799_v60  ;;  %3169 = vmatprep.mubr.bf16.mxu1 %v5799_v60  ;;  %v4960_v24 = vld [vmem:[#allocation2 + $0x2fc] ss:$20 sps:$4 sm:$0xff]   ;;  %v4963_v25 = vld [vmem:[#allocation2 + $0x304] ss:$20 sps:$4 sm:$0xff]   ;;  %v4969_v29 = vld [vmem:[#allocation2 + $0x32c] ss:$20 sps:$4 sm:$0xff]  }
  0x80   : > { %v4966_v28 = vld [vmem:[#allocation2 + $0x324] ss:$20 sps:$4 sm:$0xff]   ;;  %v4978_v36 = vld [vmem:[#allocation2 + $0x374] ss:$20 sps:$4 sm:$0xff]   ;;  %v4981_v37 = vld [vmem:[#allocation2 + $0x37c] ss:$20 sps:$4 sm:$0xff]  }
  0x81   : > { %2947 = vmatpush1.bf16.msra.mxu0 %v4890_v30  ;;  %3152 = vmatpush1.bf16.msra.mxu1 %v4891_v31  ;;  %v4964_v30 = vld [vmem:[#allocation2 + $0x320] ss:$20 sps:$4 sm:$0xff]   ;;  %v4967_v31 = vld [vmem:[#allocation2 + $0x328] ss:$20 sps:$4 sm:$0xff]   ;;  %v4976_v38 = vld [vmem:[#allocation2 + $0x370] ss:$20 sps:$4 sm:$0xff]  }
  0x82   : > { %2948 = vmatprep.subr.bf16.mxu0 %v4892_v32  ;;  %3153 = vmatprep.subr.bf16.mxu1 %v4894_v33  ;;  %v4972_v32 = vld [vmem:[#allocation2 + $0x34c] ss:$20 sps:$4 sm:$0xff]   ;;  %v4975_v33 = vld [vmem:[#allocation2 + $0x354] ss:$20 sps:$4 sm:$0xff]   ;;  %v4997_v54 = vld [vmem:[#allocation2 + $0x3f0] ss:$20 sps:$4 sm:$0xff]  }
  0x83   : > { %v4982_v42 = vld [vmem:[#allocation2 + $0x398] ss:$20 sps:$4 sm:$0xff]   ;;  %s254_s17 = scalar_lea.vmem [#allocation8], %s253_s15  ;;  %vm3994_vm1 = vcmask 516096   ;;  %s3997_s22 = scalar_lea.sflag [#allocation4], %s253_s15 }
  0x84   : > { %v5003_v58 = vld [vmem:[#allocation2 + $0x418] ss:$20 sps:$4 sm:$0xff]   ;;  %s4009_s25 = sshll.u32 %s254_s17, 4  ;;  %p6076_p10 = scmp.ne.s32.totalorder %s6066_s28, 0  ;;  %s6017_s25 = int_to_ptr.vmem [resolvable:$true] %s4009_s25 }
  0x85   : > { %2949 = vmatpush1.bf16.msra.mxu0 %v4896_v34  ;;  %3154 = vmatpush1.bf16.msra.mxu1 %v4897_v35  ;;  %v4970_v34 = vld [vmem:[#allocation2 + $0x348] ss:$20 sps:$4 sm:$0xff]   ;;  %v4973_v35 = vld [vmem:[#allocation2 + $0x350] ss:$20 sps:$4 sm:$0xff]   ;;  %s5529_s13 = scalar_lea.vmem %s6017_s25, 16  ;;  %s5609_s9 = smov [#allocation8]  }
  0x86   : > { %2950 = vmatprep.subr.bf16.mxu0 %v4898_v39  ;;  %3155 = vmatprep.subr.bf16.mxu1 %v4900_v40  ;;  %v4979_v39 = vld [vmem:[#allocation2 + $0x378] ss:$20 sps:$4 sm:$0xff]   ;;  %v4984_v40 = vld [vmem:[#allocation2 + $0x39c] ss:$20 sps:$4 sm:$0xff]   ;;  %p5530_p9 = scmp.ne.s32.totalorder %s6017_s25, %s5529_s13  ;;  %s5533_s8 = sshll.u32 %s5609_s9, 4  ;;  %s5534_s8 = int_to_ptr.vmem [resolvable:$false] %s5533_s8 }
  0x87   : > { %s5535_s11 = scalar_lea.vmem %s5534_s8, 32  ;;  %p5536_p4 = scmp.lt.s32.totalorder %s6017_s25, %s5534_s8 }
  0x88   : > { %p5531_p2 = pnand %p5530_p9, %p6076_p10  ;;  %p5537_p7 = scmp.lt.s32.totalorder %s5535_s11, %s5529_s13 }
  0x89   : > { %2951 = vmatpush1.bf16.msra.mxu0 %v4902_v41  ;;  %3156 = vmatpush1.bf16.msra.mxu1 %v4903_v44  ;;  %v4987_v41 = vld [vmem:[#allocation2 + $0x3a4] ss:$20 sps:$4 sm:$0xff]   ;;  %v4985_v44 = vld [vmem:[#allocation2 + $0x3a0] ss:$20 sps:$4 sm:$0xff]  }
  0x8a   : > { %2952 = vmatprep.subr.bf16.mxu0 %v4904_v45  ;;  %3157 = vmatprep.subr.bf16.mxu1 %v4906_v46  ;;  %v4990_v45 = vld [vmem:[#allocation2 + $0x3c4] ss:$20 sps:$4 sm:$0xff]   ;;  %v4993_v46 = vld [vmem:[#allocation2 + $0x3cc] ss:$20 sps:$4 sm:$0xff]   ;;  %p5532_p3 = pneg %p5531_p2  ;;  %p5538_p8 = por %p5537_p7, %p5536_p4 }
  0x8c   : > { %p5539_p11 = pnand %p5538_p8, %p5532_p3 }
  0x8d   : > { %2953 = vmatpush1.bf16.msra.mxu0 %v4908_v47  ;;  %3158 = vmatpush1.bf16.msra.mxu1 %v4909_v48  ;;  %v4988_v47 = vld [vmem:[#allocation2 + $0x3c0] ss:$20 sps:$4 sm:$0xff]   ;;  %v4991_v48 = vld [vmem:[#allocation2 + $0x3c8] ss:$20 sps:$4 sm:$0xff]  }
  0x8e   : > { %2954 = vmatprep.subr.bf16.mxu0 %v4910_v50  ;;  %3159 = vmatprep.subr.bf16.mxu1 %v4912_v51  ;;  %v4996_v50 = vld [vmem:[#allocation2 + $0x3ec] ss:$20 sps:$4 sm:$0xff]   ;;  %v4999_v51 = vld [vmem:[#allocation2 + $0x3f4] ss:$20 sps:$4 sm:$0xff]  }
  0x91   : > { %2955 = vmatpush1.bf16.msra.mxu0 %v4914_v53  ;;  %3160 = vmatpush1.bf16.msra.mxu1 %v4915_v55  ;;  %v4994_v53 = vld [vmem:[#allocation2 + $0x3e8] ss:$20 sps:$4 sm:$0xff]  }
  0x92   : > { %2956 = vmatprep.subr.bf16.mxu0 %v4916_v56  ;;  %3161 = vmatprep.subr.bf16.mxu1 %v4918_v57  ;;  %v5002_v55 = vld [vmem:[#allocation2 + $0x414] ss:$20 sps:$4 sm:$0xff]   ;;  %v5005_v56 = vld [vmem:[#allocation2 + $0x41c] ss:$20 sps:$4 sm:$0xff]  }
  0x93   : > { %v5000_v57 = vld [vmem:[#allocation2 + $0x410] ss:$20 sps:$4 sm:$0xff]  }
  0x95   : > { %2957 = vmatpush1.bf16.msra.mxu0 %v4920_v59  ;;  %3162 = vmatpush1.bf16.msra.mxu1 %v4921_v61  ;;  %v5008_v59 = vld [vmem:[#allocation2 + $0x43c] ss:$20 sps:$4 sm:$0xff]   ;;  %v5011_v61 = vld [vmem:[#allocation2 + $0x444] ss:$20 sps:$4 sm:$0xff]  }
  0x96   : > { %2958 = vmatprep.subr.bf16.mxu0 %v4922_v62  ;;  %3163 = vmatprep.subr.bf16.mxu1 %v4924_v63  ;;  %v5006_v62 = vld [vmem:[#allocation2 + $0x438] ss:$20 sps:$4 sm:$0xff]   ;;  %v5009_v63 = vld [vmem:[#allocation2 + $0x440] ss:$20 sps:$4 sm:$0xff]  }
  0x99   : > { %2959 = vmatpush1.bf16.msra.mxu0 %v4926_v0  ;;  %3164 = vmatpush1.bf16.msra.mxu1 %v4927_v1  ;;  %v5014_v0 = vld [vmem:[#allocation2 + $0x464] ss:$20 sps:$4 sm:$0xff]   ;;  %v5017_v1 = vld [vmem:[#allocation2 + $0x46c] ss:$20 sps:$4 sm:$0xff]  }
  0x9a   : > { %2960 = vmatprep.subr.bf16.mxu0 %v4928_v2  ;;  %3165 = vmatprep.subr.bf16.mxu1 %v4930_v3  ;;  %v5012_v2 = vld [vmem:[#allocation2 + $0x460] ss:$20 sps:$4 sm:$0xff]   ;;  %v5015_v3 = vld [vmem:[#allocation2 + $0x468] ss:$20 sps:$4 sm:$0xff]  }
  0x9d   : > { %2961 = vmatpush1.bf16.msra.mxu0 %v4932_v4  ;;  %3166 = vmatpush1.bf16.msra.mxu1 %v4933_v5  ;;  %v5020_v4 = vld [vmem:[#allocation2 + $0x48c] ss:$20 sps:$4 sm:$0xff]   ;;  %v5023_v5 = vld [vmem:[#allocation2 + $0x494] ss:$20 sps:$4 sm:$0xff]  }
  0x9e   : > { %2962 = vmatprep.subr.bf16.mxu0 %v4934_v6  ;;  %3167 = vmatprep.subr.bf16.mxu1 %v4936_v7  ;;  %v5018_v6 = vld [vmem:[#allocation2 + $0x488] ss:$20 sps:$4 sm:$0xff]   ;;  %v5021_v7 = vld [vmem:[#allocation2 + $0x490] ss:$20 sps:$4 sm:$0xff]  }
  0xa1   : > { %2963 = vmatpush1.bf16.msra.mxu0 %v4938_v8  ;;  %3168 = vmatpush1.bf16.msra.mxu1 %v4939_v9  ;;  %v5026_v8 = vld [vmem:[#allocation2 + $0x4b4] ss:$20 sps:$4 sm:$0xff]   ;;  %v5029_v9 = vld [vmem:[#allocation2 + $0x4bc] ss:$20 sps:$4 sm:$0xff]  }
  0xa2   : > { %2973 = vmatprep.subr.bf16.mxu0 %v4942_v10  ;;  %3178 = vmatprep.subr.bf16.mxu1 %v4945_v11  ;;  %v745_v10 = vcombine.high %v5794_v52, %v5794_v52  ;;  %v5024_v11 = vld [vmem:[#allocation2 + $0x4b0] ss:$20 sps:$4 sm:$0xff]  }
  0xa4   : > { %2965 = vmatmul.mubr.bf16.vlgmr.msra.gmra.mrb[0].mxu0 %v5804_v13  ;;  %3170 = vmatmul.mubr.bf16.vlgmr.msra.gmra.mrb[0].mxu1 %v5804_v13 }
  0xa5   : > { %2974 = vmatpush1.bf16.msra.mxu0 %v4940_v12  ;;  %3179 = vmatpush1.bf16.msra.mxu1 %v4943_v14  ;;  %v5027_v12 = vld [vmem:[#allocation2 + $0x4b8] ss:$20 sps:$4 sm:$0xff]   ;;  %v5032_v14 = vld [vmem:[#allocation2 + $0x4dc] ss:$20 sps:$4 sm:$0xff]  }
  0xa6   : > { %2975 = vmatprep.subr.bf16.mxu0 %v4948_v15  ;;  %3180 = vmatprep.subr.bf16.mxu1 %v4951_v16  ;;  %v5035_v15 = vld [vmem:[#allocation2 + $0x4e4] ss:$20 sps:$4 sm:$0xff]   ;;  %v5817_v16 = vrot.slane %v745_v10, %v5791_v49 }
  0xa7   : > { %3005 = vmatprep.mubr.bf16.mxu0 %v5808_v17  ;;  %3210 = vmatprep.mubr.bf16.mxu1 %v5808_v17  ;;  %v5110_v10 = vld [vmem:[#allocation2 + $0x6e4] ss:$20 sps:$4 sm:$0xff]  }
  0xa8   : > { %v761_v52 = vcombine.high %v5817_v16, %v5817_v16 }
  0xa9   : > { %2976 = vmatpush1.bf16.msra.mxu0 %v4946_v18  ;;  %3181 = vmatpush1.bf16.msra.mxu1 %v4949_v19  ;;  %v5030_v18 = vld [vmem:[#allocation2 + $0x4d8] ss:$20 sps:$4 sm:$0xff]   ;;  %v5033_v19 = vld [vmem:[#allocation2 + $0x4e0] ss:$20 sps:$4 sm:$0xff]  }
  0xaa   : > { %2977 = vmatprep.subr.bf16.mxu0 %v4954_v20  ;;  %3182 = vmatprep.subr.bf16.mxu1 %v4957_v21  ;;  %v5038_v20 = vld [vmem:[#allocation2 + $0x504] ss:$20 sps:$4 sm:$0xff]   ;;  %v5041_v21 = vld [vmem:[#allocation2 + $0x50c] ss:$20 sps:$4 sm:$0xff]  }
  0xad   : > { %2978 = vmatpush1.bf16.msra.mxu0 %v4952_v22  ;;  %3183 = vmatpush1.bf16.msra.mxu1 %v4955_v23  ;;  %v5036_v22 = vld [vmem:[#allocation2 + $0x500] ss:$20 sps:$4 sm:$0xff]   ;;  %v5823_v23 = vcombine.high %v5804_v13, %v5804_v13 }
  0xae   : > { %2979 = vmatprep.subr.bf16.mxu0 %v4960_v24  ;;  %3184 = vmatprep.subr.bf16.mxu1 %v4963_v25  ;;  %v5039_v24 = vld [vmem:[#allocation2 + $0x508] ss:$20 sps:$4 sm:$0xff]   ;;  %v5044_v25 = vld [vmem:[#allocation2 + $0x52c] ss:$20 sps:$4 sm:$0xff]  }
  0xb1   : > { %2980 = vmatpush1.bf16.msra.mxu0 %v4958_v26  ;;  %3185 = vmatpush1.bf16.msra.mxu1 %v4961_v27  ;;  %v5047_v26 = vld [vmem:[#allocation2 + $0x534] ss:$20 sps:$4 sm:$0xff]   ;;  %v5826_v27 = vrot.slane %v761_v52, %v5791_v49  ;;  %v5125_v52 = vld [vmem:[#allocation2 + $0x73c] ss:$20 sps:$4 sm:$0xff]  }
  0xb2   : > { %2981 = vmatprep.subr.bf16.mxu0 %v4966_v28  ;;  %3186 = vmatprep.subr.bf16.mxu1 %v4969_v29  ;;  %v5042_v28 = vld [vmem:[#allocation2 + $0x528] ss:$20 sps:$4 sm:$0xff]   ;;  %v5045_v29 = vld [vmem:[#allocation2 + $0x530] ss:$20 sps:$4 sm:$0xff]  }
  0xb5   : > { %2982 = vmatpush1.bf16.msra.mxu0 %v4964_v30  ;;  %3187 = vmatpush1.bf16.msra.mxu1 %v4967_v31  ;;  %v5050_v30 = vld [vmem:[#allocation2 + $0x554] ss:$20 sps:$4 sm:$0xff]   ;;  %v5053_v31 = vld [vmem:[#allocation2 + $0x55c] ss:$20 sps:$4 sm:$0xff]  }
  0xb6   : > { %2983 = vmatprep.subr.bf16.mxu0 %v4972_v32  ;;  %3188 = vmatprep.subr.bf16.mxu1 %v4975_v33  ;;  %v5048_v32 = vld [vmem:[#allocation2 + $0x550] ss:$20 sps:$4 sm:$0xff]   ;;  %v5051_v33 = vld [vmem:[#allocation2 + $0x558] ss:$20 sps:$4 sm:$0xff]  }
  0xb9   : > { %2984 = vmatpush1.bf16.msra.mxu0 %v4970_v34  ;;  %3189 = vmatpush1.bf16.msra.mxu1 %v4973_v35  ;;  %v5056_v34 = vld [vmem:[#allocation2 + $0x57c] ss:$20 sps:$4 sm:$0xff]   ;;  %v5059_v35 = vld [vmem:[#allocation2 + $0x584] ss:$20 sps:$4 sm:$0xff]  }
  0xba   : > { %2985 = vmatprep.subr.bf16.mxu0 %v4978_v36  ;;  %3190 = vmatprep.subr.bf16.mxu1 %v4981_v37  ;;  %v5054_v36 = vld [vmem:[#allocation2 + $0x578] ss:$20 sps:$4 sm:$0xff]   ;;  %v5057_v37 = vld [vmem:[#allocation2 + $0x580] ss:$20 sps:$4 sm:$0xff]  }
  0xbd   : > { %2986 = vmatpush1.bf16.msra.mxu0 %v4976_v38  ;;  %3191 = vmatpush1.bf16.msra.mxu1 %v4979_v39  ;;  %v5062_v38 = vld [vmem:[#allocation2 + $0x5a4] ss:$20 sps:$4 sm:$0xff]   ;;  %v5065_v39 = vld [vmem:[#allocation2 + $0x5ac] ss:$20 sps:$4 sm:$0xff]  }
  0xbe   : > { %2987 = vmatprep.subr.bf16.mxu0 %v4984_v40  ;;  %3192 = vmatprep.subr.bf16.mxu1 %v4987_v41  ;;  %v5060_v40 = vld [vmem:[#allocation2 + $0x5a0] ss:$20 sps:$4 sm:$0xff]   ;;  %v5063_v41 = vld [vmem:[#allocation2 + $0x5a8] ss:$20 sps:$4 sm:$0xff]  }
  0xc1   : > { %2988 = vmatpush1.bf16.msra.mxu0 %v4982_v42  ;;  %3193 = vmatpush1.bf16.msra.mxu1 %v4985_v44  ;;  %v5068_v42 = vld [vmem:[#allocation2 + $0x5cc] ss:$20 sps:$4 sm:$0xff]   ;;  %v5071_v44 = vld [vmem:[#allocation2 + $0x5d4] ss:$20 sps:$4 sm:$0xff]  }
  0xc2   : > { %2989 = vmatprep.subr.bf16.mxu0 %v4990_v45  ;;  %3194 = vmatprep.subr.bf16.mxu1 %v4993_v46  ;;  %v5066_v45 = vld [vmem:[#allocation2 + $0x5c8] ss:$20 sps:$4 sm:$0xff]   ;;  %v5069_v46 = vld [vmem:[#allocation2 + $0x5d0] ss:$20 sps:$4 sm:$0xff]  }
  0xc5   : > { %2990 = vmatpush1.bf16.msra.mxu0 %v4988_v47  ;;  %3195 = vmatpush1.bf16.msra.mxu1 %v4991_v48  ;;  %v5074_v47 = vld [vmem:[#allocation2 + $0x5f4] ss:$20 sps:$4 sm:$0xff]   ;;  %v5077_v48 = vld [vmem:[#allocation2 + $0x5fc] ss:$20 sps:$4 sm:$0xff]  }
  0xc6   : > { %2991 = vmatprep.subr.bf16.mxu0 %v4996_v50  ;;  %3196 = vmatprep.subr.bf16.mxu1 %v4999_v51  ;;  %v5072_v50 = vld [vmem:[#allocation2 + $0x5f0] ss:$20 sps:$4 sm:$0xff]   ;;  %v5075_v51 = vld [vmem:[#allocation2 + $0x5f8] ss:$20 sps:$4 sm:$0xff]  }
  0xc9   : > { %2992 = vmatpush1.bf16.msra.mxu0 %v4994_v53  ;;  %3197 = vmatpush1.bf16.msra.mxu1 %v4997_v54  ;;  %v5080_v53 = vld [vmem:[#allocation2 + $0x61c] ss:$20 sps:$4 sm:$0xff]   ;;  %v5083_v54 = vld [vmem:[#allocation2 + $0x624] ss:$20 sps:$4 sm:$0xff]  }
  0xca   : > { %2993 = vmatprep.subr.bf16.mxu0 %v5002_v55  ;;  %3198 = vmatprep.subr.bf16.mxu1 %v5005_v56  ;;  %v5078_v55 = vld [vmem:[#allocation2 + $0x618] ss:$20 sps:$4 sm:$0xff]   ;;  %v5081_v56 = vld [vmem:[#allocation2 + $0x620] ss:$20 sps:$4 sm:$0xff]  }
  0xcd   : > { %2994 = vmatpush1.bf16.msra.mxu0 %v5000_v57  ;;  %3199 = vmatpush1.bf16.msra.mxu1 %v5003_v58  ;;  %v5086_v57 = vld [vmem:[#allocation2 + $0x644] ss:$20 sps:$4 sm:$0xff]   ;;  %v5089_v58 = vld [vmem:[#allocation2 + $0x64c] ss:$20 sps:$4 sm:$0xff]  }
  0xce   : > { %2995 = vmatprep.subr.bf16.mxu0 %v5008_v59  ;;  %3200 = vmatprep.subr.bf16.mxu1 %v5011_v61  ;;  %v5084_v59 = vld [vmem:[#allocation2 + $0x640] ss:$20 sps:$4 sm:$0xff]   ;;  %v5087_v61 = vld [vmem:[#allocation2 + $0x648] ss:$20 sps:$4 sm:$0xff]  }
  0xd1   : > { %2996 = vmatpush1.bf16.msra.mxu0 %v5006_v62  ;;  %3201 = vmatpush1.bf16.msra.mxu1 %v5009_v63  ;;  %v5092_v62 = vld [vmem:[#allocation2 + $0x66c] ss:$20 sps:$4 sm:$0xff]   ;;  %v5095_v63 = vld [vmem:[#allocation2 + $0x674] ss:$20 sps:$4 sm:$0xff]  }
  0xd2   : > { %2997 = vmatprep.subr.bf16.mxu0 %v5014_v0  ;;  %3202 = vmatprep.subr.bf16.mxu1 %v5017_v1  ;;  %v5090_v0 = vld [vmem:[#allocation2 + $0x668] ss:$20 sps:$4 sm:$0xff]   ;;  %v5093_v1 = vld [vmem:[#allocation2 + $0x670] ss:$20 sps:$4 sm:$0xff]  }
  0xd5   : > { %2998 = vmatpush1.bf16.msra.mxu0 %v5012_v2  ;;  %3203 = vmatpush1.bf16.msra.mxu1 %v5015_v3  ;;  %v5098_v2 = vld [vmem:[#allocation2 + $0x694] ss:$20 sps:$4 sm:$0xff]   ;;  %v5101_v3 = vld [vmem:[#allocation2 + $0x69c] ss:$20 sps:$4 sm:$0xff]  }
  0xd6   : > { %2999 = vmatprep.subr.bf16.mxu0 %v5020_v4  ;;  %3204 = vmatprep.subr.bf16.mxu1 %v5023_v5  ;;  %v5096_v4 = vld [vmem:[#allocation2 + $0x690] ss:$20 sps:$4 sm:$0xff]   ;;  %v5099_v5 = vld [vmem:[#allocation2 + $0x698] ss:$20 sps:$4 sm:$0xff]  }
  0xd9   : > { %3000 = vmatpush1.bf16.msra.mxu0 %v5018_v6  ;;  %3205 = vmatpush1.bf16.msra.mxu1 %v5021_v7  ;;  %v5104_v6 = vld [vmem:[#allocation2 + $0x6bc] ss:$20 sps:$4 sm:$0xff]   ;;  %v5107_v7 = vld [vmem:[#allocation2 + $0x6c4] ss:$20 sps:$4 sm:$0xff]  }
  0xda   : > { %3001 = vmatprep.subr.bf16.mxu0 %v5026_v8  ;;  %3206 = vmatprep.subr.bf16.mxu1 %v5029_v9  ;;  %v5102_v8 = vld [vmem:[#allocation2 + $0x6b8] ss:$20 sps:$4 sm:$0xff]   ;;  %v5105_v9 = vld [vmem:[#allocation2 + $0x6c0] ss:$20 sps:$4 sm:$0xff]  }
  0xdd   : > { %3002 = vmatpush1.bf16.msra.mxu0 %v5024_v11  ;;  %3207 = vmatpush1.bf16.msra.mxu1 %v5027_v12  ;;  %v5113_v11 = vld [vmem:[#allocation2 + $0x6ec] ss:$20 sps:$4 sm:$0xff]  }
  0xde   : > { %3003 = vmatprep.subr.bf16.mxu0 %v5032_v14  ;;  %3208 = vmatprep.subr.bf16.mxu1 %v5035_v15  ;;  %v5108_v12 = vld [vmem:[#allocation2 + $0x6e0] ss:$20 sps:$4 sm:$0xff]   ;;  %v5111_v14 = vld [vmem:[#allocation2 + $0x6e8] ss:$20 sps:$4 sm:$0xff]  }
  0xdf   : > { %v5116_v15 = vld [vmem:[#allocation2 + $0x70c] ss:$20 sps:$4 sm:$0xff]  }
  0xe1   : > { %3004 = vmatpush1.bf16.msra.mxu0 %v5030_v18  ;;  %3209 = vmatpush1.bf16.msra.mxu1 %v5033_v19  ;;  %v5119_v18 = vld [vmem:[#allocation2 + $0x714] ss:$20 sps:$4 sm:$0xff]  }
  0xe2   : > { %3014 = vmatprep.subr.bf16.mxu0 %v5038_v20  ;;  %3219 = vmatprep.subr.bf16.mxu1 %v5041_v21  ;;  %v5114_v19 = vld [vmem:[#allocation2 + $0x708] ss:$20 sps:$4 sm:$0xff]   ;;  %v5117_v20 = vld [vmem:[#allocation2 + $0x710] ss:$20 sps:$4 sm:$0xff]  }
  0xe3   : > { %v5122_v21 = vld [vmem:[#allocation2 + $0x734] ss:$20 sps:$4 sm:$0xff]  }
  0xe4   : > { %3006 = vmatmul.mubr.bf16.vlgmr.msra.gmra.mrb[0].mxu0 %v5823_v23  ;;  %3211 = vmatmul.mubr.bf16.vlgmr.msra.gmra.mrb[0].mxu1 %v5823_v23 }
  0xe5   : > { %3015 = vmatpush1.bf16.msra.mxu0 %v5036_v22  ;;  %3220 = vmatpush1.bf16.msra.mxu1 %v5039_v24  ;;  %v5120_v22 = vld [vmem:[#allocation2 + $0x730] ss:$20 sps:$4 sm:$0xff]   ;;  %v5123_v24 = vld [vmem:[#allocation2 + $0x738] ss:$20 sps:$4 sm:$0xff]  }
  0xe6   : > { %3016 = vmatprep.subr.bf16.mxu0 %v5044_v25  ;;  %3221 = vmatprep.subr.bf16.mxu1 %v5047_v26  ;;  %v5128_v25 = vld [vmem:[#allocation2 + $0x75c] ss:$20 sps:$4 sm:$0xff]   ;;  %v5131_v26 = vld [vmem:[#allocation2 + $0x764] ss:$20 sps:$4 sm:$0xff]  }
  0xe7   : > { %3046 = vmatprep.mubr.bf16.mxu0 %v5826_v27  ;;  %3251 = vmatprep.mubr.bf16.mxu1 %v5826_v27 }
  0xe9   : > { %3017 = vmatpush1.bf16.msra.mxu0 %v5042_v28  ;;  %3222 = vmatpush1.bf16.msra.mxu1 %v5045_v29  ;;  %v5126_v28 = vld [vmem:[#allocation2 + $0x758] ss:$20 sps:$4 sm:$0xff]   ;;  %v5129_v29 = vld [vmem:[#allocation2 + $0x760] ss:$20 sps:$4 sm:$0xff]  }
  0xea   : > { %3018 = vmatprep.subr.bf16.mxu0 %v5050_v30  ;;  %3223 = vmatprep.subr.bf16.mxu1 %v5053_v31  ;;  %v5135_v30 = vld [vmem:[#allocation2 + $0x784] ss:$20 sps:$4 sm:$0xff]   ;;  %v5138_v31 = vld [vmem:[#allocation2 + $0x78c] ss:$20 sps:$4 sm:$0xff]  }
  0xed   : > { %3019 = vmatpush1.bf16.msra.mxu0 %v5048_v32  ;;  %3224 = vmatpush1.bf16.msra.mxu1 %v5051_v33  ;;  %v5133_v32 = vld [vmem:[#allocation2 + $0x780] ss:$20 sps:$4 sm:$0xff]   ;;  %v5834_v33 = vrot.slane %v5817_v16, %v5791_v49  ;;  %v5142_v16 = vld [vmem:[#allocation2 + $0x7b0] ss:$20 sps:$4 sm:$0xff]  }
  0xee   : > { %3020 = vmatprep.subr.bf16.mxu0 %v5056_v34  ;;  %3225 = vmatprep.subr.bf16.mxu1 %v5059_v35  ;;  %v5136_v34 = vld [vmem:[#allocation2 + $0x788] ss:$20 sps:$4 sm:$0xff]   ;;  %v5141_v35 = vld [vmem:[#allocation2 + $0x7ac] ss:$20 sps:$4 sm:$0xff]  }
  0xf1   : > { %3021 = vmatpush1.bf16.msra.mxu0 %v5054_v36  ;;  %3226 = vmatpush1.bf16.msra.mxu1 %v5057_v37  ;;  %v5144_v36 = vld [vmem:[#allocation2 + $0x7b4] ss:$20 sps:$4 sm:$0xff]   ;;  %v5838_v37 = vcombine.high %v5826_v27, %v5826_v27 }
  0xf2   : > { %3022 = vmatprep.subr.bf16.mxu0 %v5062_v38  ;;  %3227 = vmatprep.subr.bf16.mxu1 %v5065_v39  ;;  %v5139_v38 = vld [vmem:[#allocation2 + $0x7a8] ss:$20 sps:$4 sm:$0xff]  }
  0xf3   : > { %v5147_v39 = vld [vmem:[#allocation2 + $0x7d4] ss:$20 sps:$4 sm:$0xff]  }
  0xf5   : > { %3023 = vmatpush1.bf16.msra.mxu0 %v5060_v40  ;;  %3228 = vmatpush1.bf16.msra.mxu1 %v5063_v41  ;;  %v5150_v40 = vld [vmem:[#allocation2 + $0x7dc] ss:$20 sps:$4 sm:$0xff]  }
  0xf6   : > { %3024 = vmatprep.subr.bf16.mxu0 %v5068_v42  ;;  %3229 = vmatprep.subr.bf16.mxu1 %v5071_v44  ;;  %v5145_v41 = vld [vmem:[#allocation2 + $0x7d0] ss:$20 sps:$4 sm:$0xff]   ;;  %v5148_v42 = vld [vmem:[#allocation2 + $0x7d8] ss:$20 sps:$4 sm:$0xff]  }
  0xf7   : > { %v5153_v44 = vld [vmem:[#allocation2 + $0x7fc] ss:$20 sps:$4 sm:$0xff]  }
  0xf9   : > { %3025 = vmatpush1.bf16.msra.mxu0 %v5066_v45  ;;  %3230 = vmatpush1.bf16.msra.mxu1 %v5069_v46  ;;  %v5156_v45 = vld [vmem:[#allocation2 + $0x804] ss:$20 sps:$4 sm:$0xff]  }
  0xfa   : > { %3026 = vmatprep.subr.bf16.mxu0 %v5074_v47  ;;  %3231 = vmatprep.subr.bf16.mxu1 %v5077_v48  ;;  %v5151_v46 = vld [vmem:[#allocation2 + $0x7f8] ss:$20 sps:$4 sm:$0xff]   ;;  %v5154_v47 = vld [vmem:[#allocation2 + $0x800] ss:$20 sps:$4 sm:$0xff]  }
  0xfb   : > { %v5159_v48 = vld [vmem:[#allocation2 + $0x824] ss:$20 sps:$4 sm:$0xff]  }
  0xfd   : > { %3027 = vmatpush1.bf16.msra.mxu0 %v5072_v50  ;;  %3232 = vmatpush1.bf16.msra.mxu1 %v5075_v51  ;;  %v5162_v50 = vld [vmem:[#allocation2 + $0x82c] ss:$20 sps:$4 sm:$0xff]  }
  0xfe   : > { %3028 = vmatprep.subr.bf16.mxu0 %v5080_v53  ;;  %3233 = vmatprep.subr.bf16.mxu1 %v5083_v54  ;;  %v5157_v51 = vld [vmem:[#allocation2 + $0x820] ss:$20 sps:$4 sm:$0xff]   ;;  %v5160_v53 = vld [vmem:[#allocation2 + $0x828] ss:$20 sps:$4 sm:$0xff]  }
  0xff   : > { %v5165_v54 = vld [vmem:[#allocation2 + $0x84c] ss:$20 sps:$4 sm:$0xff]  }
 0x101   : > { %3029 = vmatpush1.bf16.msra.mxu0 %v5078_v55  ;;  %3234 = vmatpush1.bf16.msra.mxu1 %v5081_v56  ;;  %v5168_v55 = vld [vmem:[#allocation2 + $0x854] ss:$20 sps:$4 sm:$0xff]  }
 0x102   : > { %3030 = vmatprep.subr.bf16.mxu0 %v5086_v57  ;;  %3235 = vmatprep.subr.bf16.mxu1 %v5089_v58  ;;  %v5163_v56 = vld [vmem:[#allocation2 + $0x848] ss:$20 sps:$4 sm:$0xff]   ;;  %v5166_v57 = vld [vmem:[#allocation2 + $0x850] ss:$20 sps:$4 sm:$0xff]  }
 0x103   : > { %v5171_v58 = vld [vmem:[#allocation2 + $0x874] ss:$20 sps:$4 sm:$0xff]  }
 0x105   : > { %3031 = vmatpush1.bf16.msra.mxu0 %v5084_v59  ;;  %3236 = vmatpush1.bf16.msra.mxu1 %v5087_v61  ;;  %v5174_v59 = vld [vmem:[#allocation2 + $0x87c] ss:$20 sps:$4 sm:$0xff]  }
 0x106   : > { %3032 = vmatprep.subr.bf16.mxu0 %v5092_v62  ;;  %3237 = vmatprep.subr.bf16.mxu1 %v5095_v63  ;;  %v5169_v61 = vld [vmem:[#allocation2 + $0x870] ss:$20 sps:$4 sm:$0xff]   ;;  %v5172_v62 = vld [vmem:[#allocation2 + $0x878] ss:$20 sps:$4 sm:$0xff]  }
 0x107   : > { %v5177_v63 = vld [vmem:[#allocation2 + $0x89c] ss:$20 sps:$4 sm:$0xff]  }
 0x109   : > { %3033 = vmatpush1.bf16.msra.mxu0 %v5090_v0  ;;  %3238 = vmatpush1.bf16.msra.mxu1 %v5093_v1  ;;  %v5180_v0 = vld [vmem:[#allocation2 + $0x8a4] ss:$20 sps:$4 sm:$0xff]  }
 0x10a   : > { %3034 = vmatprep.subr.bf16.mxu0 %v5098_v2  ;;  %3239 = vmatprep.subr.bf16.mxu1 %v5101_v3  ;;  %v5175_v1 = vld [vmem:[#allocation2 + $0x898] ss:$20 sps:$4 sm:$0xff]   ;;  %v5178_v2 = vld [vmem:[#allocation2 + $0x8a0] ss:$20 sps:$4 sm:$0xff]  }
 0x10b   : > { %v5183_v3 = vld [vmem:[#allocation2 + $0x8c4] ss:$20 sps:$4 sm:$0xff]  }
 0x10d   : > { %3035 = vmatpush1.bf16.msra.mxu0 %v5096_v4  ;;  %3240 = vmatpush1.bf16.msra.mxu1 %v5099_v5  ;;  %v5186_v4 = vld [vmem:[#allocation2 + $0x8cc] ss:$20 sps:$4 sm:$0xff]  }
 0x10e   : > { %3036 = vmatprep.subr.bf16.mxu0 %v5104_v6  ;;  %3241 = vmatprep.subr.bf16.mxu1 %v5107_v7  ;;  %v5181_v5 = vld [vmem:[#allocation2 + $0x8c0] ss:$20 sps:$4 sm:$0xff]   ;;  %v5184_v6 = vld [vmem:[#allocation2 + $0x8c8] ss:$20 sps:$4 sm:$0xff]  }
 0x10f   : > { %v5189_v7 = vld [vmem:[#allocation2 + $0x8ec] ss:$20 sps:$4 sm:$0xff]  }
 0x111   : > { %3037 = vmatpush1.bf16.msra.mxu0 %v5102_v8  ;;  %3242 = vmatpush1.bf16.msra.mxu1 %v5105_v9  ;;  %v5192_v8 = vld [vmem:[#allocation2 + $0x8f4] ss:$20 sps:$4 sm:$0xff]  }
 0x112   : > { %3038 = vmatprep.subr.bf16.mxu0 %v5110_v10  ;;  %3243 = vmatprep.subr.bf16.mxu1 %v5113_v11  ;;  %v5187_v9 = vld [vmem:[#allocation2 + $0x8e8] ss:$20 sps:$4 sm:$0xff]   ;;  %v5190_v10 = vld [vmem:[#allocation2 + $0x8f0] ss:$20 sps:$4 sm:$0xff]  }
 0x113   : > { %v5195_v11 = vld [vmem:[#allocation2 + $0x914] ss:$20 sps:$4 sm:$0xff]  }
 0x115   : > { %3039 = vmatpush1.bf16.msra.mxu0 %v5108_v12  ;;  %3244 = vmatpush1.bf16.msra.mxu1 %v5111_v14  ;;  %v5198_v12 = vld [vmem:[#allocation2 + $0x91c] ss:$20 sps:$4 sm:$0xff]  }
 0x116   : > { %3040 = vmatprep.subr.bf16.mxu0 %v5116_v15  ;;  %3245 = vmatprep.subr.bf16.mxu1 %v5119_v18  ;;  %v5193_v14 = vld [vmem:[#allocation2 + $0x910] ss:$20 sps:$4 sm:$0xff]   ;;  %v5196_v15 = vld [vmem:[#allocation2 + $0x918] ss:$20 sps:$4 sm:$0xff]  }
 0x117   : > { %v5201_v18 = vld [vmem:[#allocation2 + $0x93c] ss:$20 sps:$4 sm:$0xff]  }
 0x119   : > { %3041 = vmatpush1.bf16.msra.mxu0 %v5114_v19  ;;  %3246 = vmatpush1.bf16.msra.mxu1 %v5117_v20  ;;  %v5204_v19 = vld [vmem:[#allocation2 + $0x944] ss:$20 sps:$4 sm:$0xff]  }
 0x11a   : > { %3042 = vmatprep.subr.bf16.mxu0 %v5122_v21  ;;  %3247 = vmatprep.subr.bf16.mxu1 %v5125_v52  ;;  %v5199_v20 = vld [vmem:[#allocation2 + $0x938] ss:$20 sps:$4 sm:$0xff]   ;;  %v5202_v21 = vld [vmem:[#allocation2 + $0x940] ss:$20 sps:$4 sm:$0xff]  }
 0x11b   : > { %v5207_v52 = vld [vmem:[#allocation2 + $0x964] ss:$20 sps:$4 sm:$0xff]  }
 0x11d   : > { %3043 = vmatpush1.bf16.msra.mxu0 %v5120_v22  ;;  %3248 = vmatpush1.bf16.msra.mxu1 %v5123_v24  ;;  %v5210_v22 = vld [vmem:[#allocation2 + $0x96c] ss:$20 sps:$4 sm:$0xff]  }
 0x11e   : > { %3044 = vmatprep.subr.bf16.mxu0 %v5128_v25  ;;  %3249 = vmatprep.subr.bf16.mxu1 %v5131_v26  ;;  %v5205_v24 = vld [vmem:[#allocation2 + $0x960] ss:$20 sps:$4 sm:$0xff]   ;;  %v5208_v25 = vld [vmem:[#allocation2 + $0x968] ss:$20 sps:$4 sm:$0xff]  }
 0x11f   : > { %v5213_v26 = vld [vmem:[#allocation2 + $0x98c] ss:$20 sps:$4 sm:$0xff]  }
 0x121   : > { %3045 = vmatpush1.bf16.msra.mxu0 %v5126_v28  ;;  %3250 = vmatpush1.bf16.msra.mxu1 %v5129_v29  ;;  %v5216_v28 = vld [vmem:[#allocation2 + $0x994] ss:$20 sps:$4 sm:$0xff]  }
 0x122   : > { %3055 = vmatprep.subr.bf16.mxu0 %v5135_v30  ;;  %3260 = vmatprep.subr.bf16.mxu1 %v5138_v31  ;;  %v5211_v29 = vld [vmem:[#allocation2 + $0x988] ss:$20 sps:$4 sm:$0xff]   ;;  %v5214_v30 = vld [vmem:[#allocation2 + $0x990] ss:$20 sps:$4 sm:$0xff]  }
 0x123   : > { %v5219_v31 = vld [vmem:[#allocation2 + $0x9b4] ss:$20 sps:$4 sm:$0xff]  }
 0x124   : > { %3047 = vmatmul.mubr.bf16.vlgmr.msra.gmra.mrb[0].mxu0 %v5834_v33  ;;  %3252 = vmatmul.mubr.bf16.vlgmr.msra.gmra.mrb[0].mxu1 %v5834_v33 }
 0x125   : > { %3056 = vmatpush1.bf16.msra.mxu0 %v5133_v32  ;;  %3261 = vmatpush1.bf16.msra.mxu1 %v5136_v34  ;;  %v5222_v32 = vld [vmem:[#allocation2 + $0x9bc] ss:$20 sps:$4 sm:$0xff]  }
 0x126   : > { %3057 = vmatprep.subr.bf16.mxu0 %v5141_v35  ;;  %3262 = vmatprep.subr.bf16.mxu1 %v5144_v36  ;;  %v5217_v34 = vld [vmem:[#allocation2 + $0x9b0] ss:$20 sps:$4 sm:$0xff]   ;;  %v5220_v35 = vld [vmem:[#allocation2 + $0x9b8] ss:$20 sps:$4 sm:$0xff]  }
 0x127   : > { %3087 = vmatprep.mubr.bf16.mxu0 %v5838_v37  ;;  %3292 = vmatprep.mubr.bf16.mxu1 %v5838_v37  ;;  %v5225_v36 = vld [vmem:[#allocation2 + $0x9dc] ss:$20 sps:$4 sm:$0xff]  }
 0x129   : > { %3058 = vmatpush1.bf16.msra.mxu0 %v5139_v38  ;;  %3263 = vmatpush1.bf16.msra.mxu1 %v5142_v16  ;;  %v5228_v38 = vld [vmem:[#allocation2 + $0x9e4] ss:$20 sps:$4 sm:$0xff]   ;;  %v5845_v16 = vld.sshfl [vmem:[%s5788_s14 + $0x8] sm:$0x11 pattern:$0x75316420] }
 0x12a   : > { %3059 = vmatprep.subr.bf16.mxu0 %v5147_v39  ;;  %3264 = vmatprep.subr.bf16.mxu1 %v5150_v40  ;;  %v5223_v39 = vld [vmem:[#allocation2 + $0x9d8] ss:$20 sps:$4 sm:$0xff]   ;;  %v5226_v40 = vld [vmem:[#allocation2 + $0x9e0] ss:$20 sps:$4 sm:$0xff]  }
 0x12d   : > { %3060 = vmatpush1.bf16.msra.mxu0 %v5145_v41  ;;  %3265 = vmatpush1.bf16.msra.mxu1 %v5148_v42  ;;  %v5231_v41 = vld [vmem:[#allocation2 + $0xa04] ss:$20 sps:$4 sm:$0xff]   ;;  %v5234_v42 = vld [vmem:[#allocation2 + $0xa0c] ss:$20 sps:$4 sm:$0xff]  }
 0x12e   : > { %3061 = vmatprep.subr.bf16.mxu0 %v5153_v44  ;;  %3266 = vmatprep.subr.bf16.mxu1 %v5156_v45  ;;  %v5229_v44 = vld [vmem:[#allocation2 + $0xa00] ss:$20 sps:$4 sm:$0xff]   ;;  %v801_v45 = vcombine.high %v5845_v16, %v5845_v16 }
 0x131   : > { %3062 = vmatpush1.bf16.msra.mxu0 %v5151_v46  ;;  %3267 = vmatpush1.bf16.msra.mxu1 %v5154_v47  ;;  %v5232_v46 = vld [vmem:[#allocation2 + $0xa08] ss:$20 sps:$4 sm:$0xff]   ;;  %v5851_v47 = vcombine.high %v5834_v33, %v5834_v33 }
 0x132   : > { %3063 = vmatprep.subr.bf16.mxu0 %v5159_v48  ;;  %3268 = vmatprep.subr.bf16.mxu1 %v5162_v50  ;;  %v5237_v48 = vld [vmem:[#allocation2 + $0xa2c] ss:$20 sps:$4 sm:$0xff]   ;;  %v5240_v50 = vld [vmem:[#allocation2 + $0xa34] ss:$20 sps:$4 sm:$0xff]  }
 0x135   : > { %3064 = vmatpush1.bf16.msra.mxu0 %v5157_v51  ;;  %3269 = vmatpush1.bf16.msra.mxu1 %v5160_v53  ;;  %v5235_v51 = vld [vmem:[#allocation2 + $0xa28] ss:$20 sps:$4 sm:$0xff]   ;;  %v5854_v53 = vrot.slane %v801_v45, %v5791_v49 }
 0x136   : > { %3065 = vmatprep.subr.bf16.mxu0 %v5165_v54  ;;  %3270 = vmatprep.subr.bf16.mxu1 %v5168_v55  ;;  %v5238_v54 = vld [vmem:[#allocation2 + $0xa30] ss:$20 sps:$4 sm:$0xff]   ;;  %v5243_v55 = vld [vmem:[#allocation2 + $0xa54] ss:$20 sps:$4 sm:$0xff]  }
 0x137   : > { %v5307_v45 = vld [vmem:[#allocation2 + $0xc08] ss:$20 sps:$4 sm:$0xff]  }
 0x139   : > { %3066 = vmatpush1.bf16.msra.mxu0 %v5163_v56  ;;  %3271 = vmatpush1.bf16.msra.mxu1 %v5166_v57  ;;  %v5246_v56 = vld [vmem:[#allocation2 + $0xa5c] ss:$20 sps:$4 sm:$0xff]  }
 0x13a   : > { %3067 = vmatprep.subr.bf16.mxu0 %v5171_v58  ;;  %3272 = vmatprep.subr.bf16.mxu1 %v5174_v59  ;;  %v5241_v57 = vld [vmem:[#allocation2 + $0xa50] ss:$20 sps:$4 sm:$0xff]   ;;  %v5244_v58 = vld [vmem:[#allocation2 + $0xa58] ss:$20 sps:$4 sm:$0xff]  }
 0x13b   : > { %v5249_v59 = vld [vmem:[#allocation2 + $0xa7c] ss:$20 sps:$4 sm:$0xff]  }
 0x13d   : > { %3068 = vmatpush1.bf16.msra.mxu0 %v5169_v61  ;;  %3273 = vmatpush1.bf16.msra.mxu1 %v5172_v62  ;;  %v5252_v61 = vld [vmem:[#allocation2 + $0xa84] ss:$20 sps:$4 sm:$0xff]  }
 0x13e   : > { %3069 = vmatprep.subr.bf16.mxu0 %v5177_v63  ;;  %3274 = vmatprep.subr.bf16.mxu1 %v5180_v0  ;;  %v5247_v62 = vld [vmem:[#allocation2 + $0xa78] ss:$20 sps:$4 sm:$0xff]   ;;  %v5250_v63 = vld [vmem:[#allocation2 + $0xa80] ss:$20 sps:$4 sm:$0xff]  }
 0x13f   : > { %v5255_v0 = vld [vmem:[#allocation2 + $0xaa4] ss:$20 sps:$4 sm:$0xff]  }
 0x141   : > { %3070 = vmatpush1.bf16.msra.mxu0 %v5175_v1  ;;  %3275 = vmatpush1.bf16.msra.mxu1 %v5178_v2  ;;  %v5258_v1 = vld [vmem:[#allocation2 + $0xaac] ss:$20 sps:$4 sm:$0xff]  }
 0x142   : > { %3071 = vmatprep.subr.bf16.mxu0 %v5183_v3  ;;  %3276 = vmatprep.subr.bf16.mxu1 %v5186_v4  ;;  %v5253_v2 = vld [vmem:[#allocation2 + $0xaa0] ss:$20 sps:$4 sm:$0xff]   ;;  %v5256_v3 = vld [vmem:[#allocation2 + $0xaa8] ss:$20 sps:$4 sm:$0xff]  }
 0x143   : > { %v5261_v4 = vld [vmem:[#allocation2 + $0xacc] ss:$20 sps:$4 sm:$0xff]  }
 0x145   : > { %3072 = vmatpush1.bf16.msra.mxu0 %v5181_v5  ;;  %3277 = vmatpush1.bf16.msra.mxu1 %v5184_v6  ;;  %v5264_v5 = vld [vmem:[#allocation2 + $0xad4] ss:$20 sps:$4 sm:$0xff]  }
 0x146   : > { %3073 = vmatprep.subr.bf16.mxu0 %v5189_v7  ;;  %3278 = vmatprep.subr.bf16.mxu1 %v5192_v8  ;;  %v5259_v6 = vld [vmem:[#allocation2 + $0xac8] ss:$20 sps:$4 sm:$0xff]   ;;  %v5262_v7 = vld [vmem:[#allocation2 + $0xad0] ss:$20 sps:$4 sm:$0xff]  }
 0x147   : > { %v5267_v8 = vld [vmem:[#allocation2 + $0xaf4] ss:$20 sps:$4 sm:$0xff]  }
 0x149   : > { %3074 = vmatpush1.bf16.msra.mxu0 %v5187_v9  ;;  %3279 = vmatpush1.bf16.msra.mxu1 %v5190_v10  ;;  %v5270_v9 = vld [vmem:[#allocation2 + $0xafc] ss:$20 sps:$4 sm:$0xff]  }
 0x14a   : > { %3075 = vmatprep.subr.bf16.mxu0 %v5195_v11  ;;  %3280 = vmatprep.subr.bf16.mxu1 %v5198_v12  ;;  %v5265_v10 = vld [vmem:[#allocation2 + $0xaf0] ss:$20 sps:$4 sm:$0xff]   ;;  %v5268_v11 = vld [vmem:[#allocation2 + $0xaf8] ss:$20 sps:$4 sm:$0xff]  }
 0x14b   : > { %v5273_v12 = vld [vmem:[#allocation2 + $0xb1c] ss:$20 sps:$4 sm:$0xff]  }
 0x14d   : > { %3076 = vmatpush1.bf16.msra.mxu0 %v5193_v14  ;;  %3281 = vmatpush1.bf16.msra.mxu1 %v5196_v15  ;;  %v5276_v14 = vld [vmem:[#allocation2 + $0xb24] ss:$20 sps:$4 sm:$0xff]  }
 0x14e   : > { %3077 = vmatprep.subr.bf16.mxu0 %v5201_v18  ;;  %3282 = vmatprep.subr.bf16.mxu1 %v5204_v19  ;;  %v5271_v15 = vld [vmem:[#allocation2 + $0xb18] ss:$20 sps:$4 sm:$0xff]   ;;  %v5274_v18 = vld [vmem:[#allocation2 + $0xb20] ss:$20 sps:$4 sm:$0xff]  }
 0x14f   : > { %v5279_v19 = vld [vmem:[#allocation2 + $0xb44] ss:$20 sps:$4 sm:$0xff]  }
 0x151   : > { %3078 = vmatpush1.bf16.msra.mxu0 %v5199_v20  ;;  %3283 = vmatpush1.bf16.msra.mxu1 %v5202_v21  ;;  %v5282_v20 = vld [vmem:[#allocation2 + $0xb4c] ss:$20 sps:$4 sm:$0xff]  }
 0x152   : > { %3079 = vmatprep.subr.bf16.mxu0 %v5207_v52  ;;  %3284 = vmatprep.subr.bf16.mxu1 %v5210_v22  ;;  %v5277_v21 = vld [vmem:[#allocation2 + $0xb40] ss:$20 sps:$4 sm:$0xff]   ;;  %v5280_v52 = vld [vmem:[#allocation2 + $0xb48] ss:$20 sps:$4 sm:$0xff]  }
 0x153   : > { %v5285_v22 = vld [vmem:[#allocation2 + $0xb6c] ss:$20 sps:$4 sm:$0xff]  }
 0x155   : > { %3080 = vmatpush1.bf16.msra.mxu0 %v5205_v24  ;;  %3285 = vmatpush1.bf16.msra.mxu1 %v5208_v25  ;;  %v5288_v24 = vld [vmem:[#allocation2 + $0xb74] ss:$20 sps:$4 sm:$0xff]  }
 0x156   : > { %3081 = vmatprep.subr.bf16.mxu0 %v5213_v26  ;;  %3286 = vmatprep.subr.bf16.mxu1 %v5216_v28  ;;  %v5283_v25 = vld [vmem:[#allocation2 + $0xb68] ss:$20 sps:$4 sm:$0xff]   ;;  %v5286_v26 = vld [vmem:[#allocation2 + $0xb70] ss:$20 sps:$4 sm:$0xff]  }
 0x157   : > { %v5291_v28 = vld [vmem:[#allocation2 + $0xb94] ss:$20 sps:$4 sm:$0xff]  }
 0x159   : > { %3082 = vmatpush1.bf16.msra.mxu0 %v5211_v29  ;;  %3287 = vmatpush1.bf16.msra.mxu1 %v5214_v30  ;;  %v5294_v29 = vld [vmem:[#allocation2 + $0xb9c] ss:$20 sps:$4 sm:$0xff]  }
 0x15a   : > { %3083 = vmatprep.subr.bf16.mxu0 %v5219_v31  ;;  %3288 = vmatprep.subr.bf16.mxu1 %v5222_v32  ;;  %v5289_v30 = vld [vmem:[#allocation2 + $0xb90] ss:$20 sps:$4 sm:$0xff]   ;;  %v5292_v31 = vld [vmem:[#allocation2 + $0xb98] ss:$20 sps:$4 sm:$0xff]  }
 0x15b   : > { %v5297_v32 = vld [vmem:[#allocation2 + $0xbbc] ss:$20 sps:$4 sm:$0xff]  }
 0x15d   : > { %3084 = vmatpush1.bf16.msra.mxu0 %v5217_v34  ;;  %3289 = vmatpush1.bf16.msra.mxu1 %v5220_v35  ;;  %v5300_v34 = vld [vmem:[#allocation2 + $0xbc4] ss:$20 sps:$4 sm:$0xff]  }
 0x15e   : > { %3085 = vmatprep.subr.bf16.mxu0 %v5225_v36  ;;  %3290 = vmatprep.subr.bf16.mxu1 %v5228_v38  ;;  %v5295_v35 = vld [vmem:[#allocation2 + $0xbb8] ss:$20 sps:$4 sm:$0xff]   ;;  %v5298_v36 = vld [vmem:[#allocation2 + $0xbc0] ss:$20 sps:$4 sm:$0xff]  }
 0x15f   : > { %v5303_v38 = vld [vmem:[#allocation2 + $0xbe4] ss:$20 sps:$4 sm:$0xff]  }
 0x161   : > { %3086 = vmatpush1.bf16.msra.mxu0 %v5223_v39  ;;  %3291 = vmatpush1.bf16.msra.mxu1 %v5226_v40  ;;  %v5306_v39 = vld [vmem:[#allocation2 + $0xbec] ss:$20 sps:$4 sm:$0xff]  }
 0x162   : > { %3096 = vmatprep.subr.bf16.mxu0 %v5231_v41  ;;  %3301 = vmatprep.subr.bf16.mxu1 %v5234_v42  ;;  %v5301_v40 = vld [vmem:[#allocation2 + $0xbe0] ss:$20 sps:$4 sm:$0xff]   ;;  %v5304_v41 = vld [vmem:[#allocation2 + $0xbe8] ss:$20 sps:$4 sm:$0xff]  }
 0x163   : > { %v5309_v42 = vld [vmem:[#allocation2 + $0xc0c] ss:$20 sps:$4 sm:$0xff]  }
 0x164   : > { %3088 = vmatmul.mubr.bf16.vlgmr.msra.gmra.mrb[0].mxu0 %v5851_v47  ;;  %3293 = vmatmul.mubr.bf16.vlgmr.msra.gmra.mrb[0].mxu1 %v5851_v47 }
 0x165   : > { %3097 = vmatpush1.bf16.msra.mxu0 %v5229_v44  ;;  %3302 = vmatpush1.bf16.msra.mxu1 %v5232_v46  ;;  %v5312_v44 = vld [vmem:[#allocation2 + $0xc14] ss:$20 sps:$4 sm:$0xff]   ;;  %v5310_v46 = vld [vmem:[#allocation2 + $0xc10] ss:$20 sps:$4 sm:$0xff]  }
 0x166   : > { %3098 = vmatprep.subr.bf16.mxu0 %v5237_v48  ;;  %3303 = vmatprep.subr.bf16.mxu1 %v5240_v50  ;;  %v5315_v48 = vld [vmem:[#allocation2 + $0xc34] ss:$20 sps:$4 sm:$0xff]   ;;  %v5318_v50 = vld [vmem:[#allocation2 + $0xc3c] ss:$20 sps:$4 sm:$0xff]  }
 0x167   : > { %3128 = vmatprep.mubr.bf16.mxu0 %v5854_v53  ;;  %3333 = vmatprep.mubr.bf16.mxu1 %v5854_v53 }
 0x169   : > { %3099 = vmatpush1.bf16.msra.mxu0 %v5235_v51  ;;  %3304 = vmatpush1.bf16.msra.mxu1 %v5238_v54  ;;  %v5313_v51 = vld [vmem:[#allocation2 + $0xc30] ss:$20 sps:$4 sm:$0xff]   ;;  %v5316_v54 = vld [vmem:[#allocation2 + $0xc38] ss:$20 sps:$4 sm:$0xff]  }
 0x16a   : > { %3100 = vmatprep.subr.bf16.mxu0 %v5243_v55  ;;  %3305 = vmatprep.subr.bf16.mxu1 %v5246_v56  ;;  %v5321_v55 = vld [vmem:[#allocation2 + $0xc5c] ss:$20 sps:$4 sm:$0xff]   ;;  %v5324_v56 = vld [vmem:[#allocation2 + $0xc64] ss:$20 sps:$4 sm:$0xff]  }
 0x16d   : > { %3101 = vmatpush1.bf16.msra.mxu0 %v5241_v57  ;;  %3306 = vmatpush1.bf16.msra.mxu1 %v5244_v58  ;;  %v5319_v57 = vld [vmem:[#allocation2 + $0xc58] ss:$20 sps:$4 sm:$0xff]   ;;  %v5322_v58 = vld [vmem:[#allocation2 + $0xc60] ss:$20 sps:$4 sm:$0xff]  }
 0x16e   : > { %3102 = vmatprep.subr.bf16.mxu0 %v5249_v59  ;;  %3307 = vmatprep.subr.bf16.mxu1 %v5252_v61  ;;  %v5325_v59 = vld [vmem:[#allocation2 + $0x150] ss:$20 sps:$4 sm:$0xff]  }
 0x16f   : > { %v5327_v61 = vld [vmem:[#allocation2 + $0x3d0] ss:$20 sps:$4 sm:$0xff]  }
 0x171   : > { %3103 = vmatpush1.bf16.msra.mxu0 %v5247_v62  ;;  %3308 = vmatpush1.bf16.msra.mxu1 %v5250_v63  ;;  %v5326_v62 = vld [vmem:[#allocation2 + $0x10] ss:$20 sps:$4 sm:$0xff]  }
 0x172   : > { %3104 = vmatprep.subr.bf16.mxu0 %v5255_v0  ;;  %3309 = vmatprep.subr.bf16.mxu1 %v5258_v1  ;;  %v5328_v63 = vld [vmem:[#allocation2 + $0x290] ss:$20 sps:$4 sm:$0xff]   ;;  %v5862_v0 = vrot.slane %v5845_v16, %v5791_v49  ;;  %v5329_v1 = vld [vmem:[#allocation2 + $0x178] ss:$20 sps:$4 sm:$0xff]   ;;  %v5334_v49 = vld [vmem:[#allocation2 + $0x60] ss:$20 sps:$4 sm:$0xff]  }
 0x173   : > { %v5336_v16 = vld [vmem:[#allocation2 + $0x2e0] ss:$20 sps:$4 sm:$0xff]  }
 0x175   : > { %3105 = vmatpush1.bf16.msra.mxu0 %v5253_v2  ;;  %3310 = vmatpush1.bf16.msra.mxu1 %v5256_v3  ;;  %v5331_v2 = vld [vmem:[#allocation2 + $0x3f8] ss:$20 sps:$4 sm:$0xff]  }
 0x176   : > { %3106 = vmatprep.subr.bf16.mxu0 %v5261_v4  ;;  %3311 = vmatprep.subr.bf16.mxu1 %v5264_v5  ;;  %v5330_v3 = vld [vmem:[#allocation2 + $0x38] ss:$20 sps:$4 sm:$0xff]   ;;  %v5333_v5 = vld [vmem:[#allocation2 + $0x1a0] ss:$20 sps:$4 sm:$0xff]  }
 0x177   : > { %v5332_v4 = vld [vmem:[#allocation2 + $0x2b8] ss:$20 sps:$4 sm:$0xff]  }
 0x179   : > { %3107 = vmatpush1.bf16.msra.mxu0 %v5259_v6  ;;  %3312 = vmatpush1.bf16.msra.mxu1 %v5262_v7  ;;  %v5335_v6 = vld [vmem:[#allocation2 + $0x420] ss:$20 sps:$4 sm:$0xff]   ;;  %v5337_v7 = vld [vmem:[#allocation2 + $0x1c8] ss:$20 sps:$4 sm:$0xff]  }
 0x17a   : > { %3108 = vmatprep.subr.bf16.mxu0 %v5267_v8  ;;  %3313 = vmatprep.subr.bf16.mxu1 %v5270_v9  ;;  %v5339_v8 = vld [vmem:[#allocation2 + $0x448] ss:$20 sps:$4 sm:$0xff]  }
 0x17b   : > { %v5338_v9 = vld [vmem:[#allocation2 + $0x88] ss:$20 sps:$4 sm:$0xff]  }
 0x17d   : > { %3109 = vmatpush1.bf16.msra.mxu0 %v5265_v10  ;;  %3314 = vmatpush1.bf16.msra.mxu1 %v5268_v11  ;;  %v5340_v10 = vld [vmem:[#allocation2 + $0x308] ss:$20 sps:$4 sm:$0xff]   ;;  %v5341_v11 = vld [vmem:[#allocation2 + $0x1f0] ss:$20 sps:$4 sm:$0xff]  }
 0x17e   : > { %3110 = vmatprep.subr.bf16.mxu0 %v5273_v12  ;;  %3315 = vmatprep.subr.bf16.mxu1 %v5276_v14  ;;  %v5343_v12 = vld [vmem:[#allocation2 + $0x470] ss:$20 sps:$4 sm:$0xff]  }
 0x17f   : > { %v5342_v14 = vld [vmem:[#allocation2 + $0xb0] ss:$20 sps:$4 sm:$0xff]  }
 0x181   : > { %3111 = vmatpush1.bf16.msra.mxu0 %v5271_v15  ;;  %3316 = vmatpush1.bf16.msra.mxu1 %v5274_v18  ;;  %v5347_v15 = vld [vmem:[#allocation2 + $0x498] ss:$20 sps:$4 sm:$0xff]  }
 0x182   : > { %3112 = vmatprep.subr.bf16.mxu0 %v5279_v19  ;;  %3317 = vmatprep.subr.bf16.mxu1 %v5282_v20  ;;  %v5346_v18 = vld [vmem:[#allocation2 + $0xd8] ss:$20 sps:$4 sm:$0xff]   ;;  %v5349_v20 = vld [vmem:[#allocation2 + $0x240] ss:$20 sps:$4 sm:$0xff]  }
 0x183   : > { %v5348_v19 = vld [vmem:[#allocation2 + $0x358] ss:$20 sps:$4 sm:$0xff]  }
 0x185   : > { %3113 = vmatpush1.bf16.msra.mxu0 %v5277_v21  ;;  %3318 = vmatpush1.bf16.msra.mxu1 %v5280_v52  ;;  %v5351_v21 = vld [vmem:[#allocation2 + $0x4c0] ss:$20 sps:$4 sm:$0xff]  }
 0x186   : > { %3114 = vmatprep.subr.bf16.mxu0 %v5285_v22  ;;  %3319 = vmatprep.subr.bf16.mxu1 %v5288_v24  ;;  %v5350_v52 = vld [vmem:[#allocation2 + $0x100] ss:$20 sps:$4 sm:$0xff]   ;;  %v5353_v24 = vld [vmem:[#allocation2 + $0x268] ss:$20 sps:$4 sm:$0xff]  }
 0x187   : > { %v5352_v22 = vld [vmem:[#allocation2 + $0x380] ss:$20 sps:$4 sm:$0xff]  }
 0x189   : > { %3115 = vmatpush1.bf16.msra.mxu0 %v5283_v25  ;;  %3320 = vmatpush1.bf16.msra.mxu1 %v5286_v26  ;;  %v5355_v25 = vld [vmem:[#allocation2 + $0x4e8] ss:$20 sps:$4 sm:$0xff]  }
 0x18a   : > { %3116 = vmatprep.subr.bf16.mxu0 %v5291_v28  ;;  %3321 = vmatprep.subr.bf16.mxu1 %v5294_v29  ;;  %v5354_v26 = vld [vmem:[#allocation2 + $0x128] ss:$20 sps:$4 sm:$0xff]   ;;  %v5357_v29 = vld [vmem:[#allocation2 + $0x650] ss:$20 sps:$4 sm:$0xff]  }
 0x18b   : > { %v5356_v28 = vld [vmem:[#allocation2 + $0x3a8] ss:$20 sps:$4 sm:$0xff]  }
 0x18d   : > { %3117 = vmatpush1.bf16.msra.mxu0 %v5289_v30  ;;  %3322 = vmatpush1.bf16.msra.mxu1 %v5292_v31  ;;  %v5359_v30 = vld [vmem:[#allocation2 + $0x8d0] ss:$20 sps:$4 sm:$0xff]  }
 0x18e   : > { %3118 = vmatprep.subr.bf16.mxu0 %v5297_v32  ;;  %3323 = vmatprep.subr.bf16.mxu1 %v5300_v34  ;;  %v5358_v31 = vld [vmem:[#allocation2 + $0x510] ss:$20 sps:$4 sm:$0xff]   ;;  %v5361_v34 = vld [vmem:[#allocation2 + $0x678] ss:$20 sps:$4 sm:$0xff]  }
 0x18f   : > { %v5360_v32 = vld [vmem:[#allocation2 + $0x790] ss:$20 sps:$4 sm:$0xff]  }
 0x191   : > { %3119 = vmatpush1.bf16.msra.mxu0 %v5295_v35  ;;  %3324 = vmatpush1.bf16.msra.mxu1 %v5298_v36  ;;  %v5363_v35 = vld [vmem:[#allocation2 + $0x8f8] ss:$20 sps:$4 sm:$0xff]  }
 0x192   : > { %3120 = vmatprep.subr.bf16.mxu0 %v5303_v38  ;;  %3325 = vmatprep.subr.bf16.mxu1 %v5306_v39  ;;  %v5362_v36 = vld [vmem:[#allocation2 + $0x538] ss:$20 sps:$4 sm:$0xff]   ;;  %v5365_v39 = vld [vmem:[#allocation2 + $0x6a0] ss:$20 sps:$4 sm:$0xff]  }
 0x193   : > { %v5364_v38 = vld [vmem:[#allocation2 + $0x7b8] ss:$20 sps:$4 sm:$0xff]  }
 0x195   : > { %3121 = vmatpush1.bf16.msra.mxu0 %v5301_v40  ;;  %3326 = vmatpush1.bf16.msra.mxu1 %v5304_v41  ;;  %v5367_v40 = vld [vmem:[#allocation2 + $0x920] ss:$20 sps:$4 sm:$0xff]  }
 0x196   : > { %3122 = vmatprep.subr.bf16.mxu0 %v5309_v42  ;;  %3327 = vmatprep.subr.bf16.mxu1 %v5312_v44  ;;  %v5366_v41 = vld [vmem:[#allocation2 + $0x560] ss:$20 sps:$4 sm:$0xff]   ;;  %v5370_v44 = vld [vmem:[#allocation2 + $0x588] ss:$20 sps:$4 sm:$0xff]  }
 0x197   : > { %v5368_v42 = vld [vmem:[#allocation2 + $0x7e0] ss:$20 sps:$4 sm:$0xff]  }
 0x199   : > { %3123 = vmatpush1.bf16.msra.mxu0 %v5307_v45  ;;  %3328 = vmatpush1.bf16.msra.mxu1 %v5310_v46  ;;  %v5372_v45 = vld [vmem:[#allocation2 + $0x808] ss:$20 sps:$4 sm:$0xff]   ;;  %v5373_v46 = vld [vmem:[#allocation2 + $0x6f0] ss:$20 sps:$4 sm:$0xff]  }
 0x19a   : > { %3124 = vmatprep.subr.bf16.mxu0 %v5315_v48  ;;  %3329 = vmatprep.subr.bf16.mxu1 %v5318_v50  ;;  %v5375_v48 = vld [vmem:[#allocation2 + $0x970] ss:$20 sps:$4 sm:$0xff]   ;;  %v5377_v50 = vld [vmem:[#allocation2 + $0x718] ss:$20 sps:$4 sm:$0xff]  }
 0x19d   : > { %3125 = vmatpush1.bf16.msra.mxu0 %v5313_v51  ;;  %3330 = vmatpush1.bf16.msra.mxu1 %v5316_v54  ;;  %v5379_v51 = vld [vmem:[#allocation2 + $0x998] ss:$20 sps:$4 sm:$0xff]  }
 0x19e   : > { %3126 = vmatprep.subr.bf16.mxu0 %v5321_v55  ;;  %3331 = vmatprep.subr.bf16.mxu1 %v5324_v56  ;;  %v5378_v54 = vld [vmem:[#allocation2 + $0x5d8] ss:$20 sps:$4 sm:$0xff]   ;;  %v5381_v56 = vld [vmem:[#allocation2 + $0x740] ss:$20 sps:$4 sm:$0xff]  }
 0x19f   : > { %v5380_v55 = vld [vmem:[#allocation2 + $0x858] ss:$20 sps:$4 sm:$0xff]  }
 0x1a1   : > { %3127 = vmatpush1.bf16.msra.mxu0 %v5319_v57  ;;  %3332 = vmatpush1.bf16.msra.mxu1 %v5322_v58  ;;  %v5383_v57 = vld [vmem:[#allocation2 + $0x9c0] ss:$20 sps:$4 sm:$0xff]  }
 0x1a2   : > { %4549 = vmatprep.subr.bf16.mxu0 %v5325_v59  ;;  %4571 = vmatprep.subr.bf16.mxu1 %v5327_v61  ;;  %v5382_v58 = vld [vmem:[#allocation2 + $0x600] ss:$20 sps:$4 sm:$0xff]   ;;  %v5385_v61 = vld [vmem:[#allocation2 + $0x768] ss:$20 sps:$4 sm:$0xff]  }
 0x1a3   : > { %v5384_v59 = vld [vmem:[#allocation2 + $0x880] ss:$20 sps:$4 sm:$0xff]  }
 0x1a4   : > { %3129 = vmatmul.mubr.bf16.vlgmr.msra.gmra.mrb[0].mxu0 %v5862_v0  ;;  %3334 = vmatmul.mubr.bf16.vlgmr.msra.gmra.mrb[0].mxu1 %v5862_v0 }
 0x1a5   : > { %4550 = vmatpush3.bf16.msra.mxu0 %v5326_v62  ;;  %4572 = vmatpush3.bf16.msra.mxu1 %v5328_v63  ;;  %v5387_v62 = vld [vmem:[#allocation2 + $0x9e8] ss:$20 sps:$4 sm:$0xff]  }
 0x1a6   : > { %4551 = vmatprep.subr.bf16.mxu0 %v5329_v1  ;;  %4573 = vmatprep.subr.bf16.mxu1 %v5331_v2  ;;  %v5386_v63 = vld [vmem:[#allocation2 + $0x628] ss:$20 sps:$4 sm:$0xff]   ;;  %v5389_v2 = vld [vmem:[#allocation2 + $0xb50] ss:$20 sps:$4 sm:$0xff]  }
 0x1a7   : > { %3374 = vmatprep.mubr.bf16.mxu0 %v5799_v60  ;;  %3414 = vmatprep.mubr.bf16.mxu1 %v5808_v17  ;;  %v5344_v60 = vld [vmem:[#allocation2 + $0x330] ss:$20 sps:$4 sm:$0xff]   ;;  %v5345_v17 = vld [vmem:[#allocation2 + $0x218] ss:$20 sps:$4 sm:$0xff]   ;;  %v5388_v1 = vld [vmem:[#allocation2 + $0x8a8] ss:$20 sps:$4 sm:$0xff]  }
 0x1a9   : > { %4552 = vmatpush3.bf16.msra.mxu0 %v5330_v3  ;;  %4574 = vmatpush3.bf16.msra.mxu1 %v5332_v4  ;;  %v5405_v3 = vld [vmem:[%s6060_s3 + $0x40] sm:$0xff]   ;;  %v5390_v4 = vld [vmem:[#allocation2 + $0xa10] ss:$20 sps:$4 sm:$0xff]  }
 0x1aa   : > { %4553 = vmatprep.subr.bf16.mxu0 %v5333_v5  ;;  %4575 = vmatprep.subr.bf16.mxu1 %v5335_v6  ;;  %v5391_v5 = vld [vmem:[#allocation2 + $0xb78] ss:$20 sps:$4 sm:$0xff]  }
 0x1ab   : > { %v5407_v6 = vld [vmem:[%s6060_s3] sm:$0xff]  }
 0x1ad   : > { %4554 = vmatpush3.bf16.msra.mxu0 %v5334_v49  ;;  %4576 = vmatpush3.bf16.msra.mxu1 %v5336_v16  ;;  %v5409_v49 = vld [vmem:[%s6060_s3 + $0x48] sm:$0xff]   ;;  %v5392_v16 = vld [vmem:[#allocation2 + $0xa38] ss:$20 sps:$4 sm:$0xff]  }
 0x1ae   : > { %4555 = vmatprep.subr.bf16.mxu0 %v5337_v7  ;;  %4577 = vmatprep.subr.bf16.mxu1 %v5339_v8  ;;  %v5393_v7 = vld [vmem:[#allocation2 + $0xba0] ss:$20 sps:$4 sm:$0xff]  }
 0x1af   : > { %v5411_v8 = vld [vmem:[%s6060_s3 + $0x8] sm:$0xff]  }
 0x1b1   : > { %4556 = vmatpush3.bf16.msra.mxu0 %v5338_v9  ;;  %4578 = vmatpush3.bf16.msra.mxu1 %v5340_v10  ;;  %v5413_v9 = vld [vmem:[%s6060_s3 + $0x50] sm:$0xff]   ;;  %v5417_v10 = vld [vmem:[%s6060_s3 + $0x58] sm:$0xff]  }
 0x1b2   : > { %4557 = vmatprep.subr.bf16.mxu0 %v5341_v11  ;;  %4579 = vmatprep.subr.bf16.mxu1 %v5343_v12  ;;  %v5396_v11 = vld [vmem:[#allocation2 + $0xa88] ss:$20 sps:$4 sm:$0xff]   ;;  %v5397_v12 = vld [vmem:[#allocation2 + $0xbf0] ss:$20 sps:$4 sm:$0xff]  }
 0x1b5   : > { %4558 = vmatpush3.bf16.msra.mxu0 %v5342_v14  ;;  %4580 = vmatpush3.bf16.msra.mxu1 %v5344_v60  ;;  %v5419_v14 = vld [vmem:[%s6060_s3 + $0x18] sm:$0xff]   ;;  %v5421_v60 = vld [vmem:[%s6060_s3 + $0x60] sm:$0xff]  }
 0x1b6   : > { %4559 = vmatprep.subr.bf16.mxu0 %v5345_v17  ;;  %4581 = vmatprep.subr.bf16.mxu1 %v5347_v15  ;;  %v5398_v17 = vld [vmem:[#allocation2 + $0xab0] ss:$20 sps:$4 sm:$0xff]   ;;  %v5399_v15 = vld [vmem:[#allocation2 + $0xc18] ss:$20 sps:$4 sm:$0xff]  }
 0x1b9   : > { %4560 = vmatpush3.bf16.msra.mxu0 %v5346_v18  ;;  %4582 = vmatpush3.bf16.msra.mxu1 %v5348_v19  ;;  %v5423_v18 = vld [vmem:[%s6060_s3 + $0x20] sm:$0xff]   ;;  %v5425_v19 = vld [vmem:[%s6060_s3 + $0x68] sm:$0xff]  }
 0x1ba   : > { %4561 = vmatprep.subr.bf16.mxu0 %v5349_v20  ;;  %4583 = vmatprep.subr.bf16.mxu1 %v5351_v21  ;;  %v5400_v20 = vld [vmem:[#allocation2 + $0xad8] ss:$20 sps:$4 sm:$0xff]   ;;  %v5401_v21 = vld [vmem:[#allocation2 + $0xc40] ss:$20 sps:$4 sm:$0xff]  }
 0x1bd   : > { %4562 = vmatpush3.bf16.msra.mxu0 %v5350_v52  ;;  %4584 = vmatpush3.bf16.msra.mxu1 %v5352_v22  ;;  %v5427_v52 = vld [vmem:[%s6060_s3 + $0x28] sm:$0xff]   ;;  %v5429_v22 = vld [vmem:[%s6060_s3 + $0x70] sm:$0xff]  }
 0x1be   : > { %4563 = vmatprep.subr.bf16.mxu0 %v5353_v24  ;;  %4585 = vmatprep.subr.bf16.mxu1 %v5355_v25  ;;  %v5402_v24 = vld [vmem:[#allocation2 + $0xb00] ss:$20 sps:$4 sm:$0xff]   ;;  %v5403_v25 = vld [vmem:[#allocation2 + $0xc68] ss:$20 sps:$4 sm:$0xff]  }
 0x1c1   : > { %4564 = vmatpush3.bf16.msra.mxu0 %v5354_v26  ;;  %4586 = vmatpush3.bf16.msra.mxu1 %v5356_v28  ;;  %v5431_v26 = vld [vmem:[%s6060_s3 + $0x30] sm:$0xff]   ;;  %v5433_v28 = vld [vmem:[%s6060_s3 + $0x78] sm:$0xff]  }
 0x1c2   : > { %4593 = vmatprep.subr.bf16.mxu0 %v5357_v29  ;;  %4615 = vmatprep.subr.bf16.mxu1 %v5359_v30  ;;  %v5404_v29 = vld [vmem:[#allocation2 + $0xb28] ss:$20 sps:$4 sm:$0xff]  }
 0x1c3   : > { %v5406_v30 = vld [vmem:[%s6060_s3 + $0xc0] sm:$0xff]  }
 0x1c4   : > { %3375 = vmatmul.mubr.bf16.vlgmr.msra.gmra.mrb[4].mxu0 %v5804_v13  ;;  %3415 = vmatmul.mubr.bf16.vlgmr.msra.gmra.mrb[4].mxu1 %v5823_v23  ;;  %v5369_v13 = vld [vmem:[#allocation2 + $0x6c8] ss:$20 sps:$4 sm:$0xff]  }
 0x1c5   : > { %4594 = vmatpush3.bf16.msra.mxu0 %v5358_v31  ;;  %4616 = vmatpush3.bf16.msra.mxu1 %v5360_v32  ;;  %v5371_v23 = vld [vmem:[#allocation2 + $0x948] ss:$20 sps:$4 sm:$0xff]   ;;  %v5435_v31 = vld [vmem:[%s6060_s3 + $0x38] sm:$0xff]  }
 0x1c6   : > { %4595 = vmatprep.subr.bf16.mxu0 %v5361_v34  ;;  %4617 = vmatprep.subr.bf16.mxu1 %v5363_v35  ;;  %v5408_v32 = vld [vmem:[%s6060_s3 + $0x80] sm:$0xff]   ;;  %v5410_v34 = vld [vmem:[%s6060_s3 + $0xc8] sm:$0xff]  }
 0x1c7   : > { %3454 = vmatprep.mubr.bf16.mxu0 %v5826_v27  ;;  %3494 = vmatprep.mubr.bf16.mxu1 %v5838_v37  ;;  %v5374_v27 = vld [vmem:[#allocation2 + $0x5b0] ss:$20 sps:$4 sm:$0xff]  }
 0x1c8   : > { %v5376_v37 = vld [vmem:[#allocation2 + $0x830] ss:$20 sps:$4 sm:$0xff]  }
 0x1c9   : > { %4596 = vmatpush3.bf16.msra.mxu0 %v5362_v36  ;;  %4618 = vmatpush3.bf16.msra.mxu1 %v5364_v38  ;;  %v5412_v35 = vld [vmem:[%s6060_s3 + $0x88] sm:$0xff]   ;;  %v5414_v36 = vld [vmem:[%s6060_s3 + $0xd0] sm:$0xff]  }
 0x1ca   : > { %4597 = vmatprep.subr.bf16.mxu0 %v5365_v39  ;;  %4619 = vmatprep.subr.bf16.mxu1 %v5367_v40  ;;  %v5416_v38 = vld [vmem:[%s6060_s3 + $0x90] sm:$0xff]   ;;  %v5420_v39 = vld [vmem:[%s6060_s3 + $0x98] sm:$0xff]   ;;  %v5422_v40 = vld [vmem:[%s6060_s3 + $0xe0] sm:$0xff]  }
 0x1cd   : > { %4598 = vmatpush3.bf16.msra.mxu0 %v5366_v41  ;;  %4620 = vmatpush3.bf16.msra.mxu1 %v5368_v42  ;;  %v5424_v41 = vld [vmem:[%s6060_s3 + $0xa0] sm:$0xff]   ;;  %v5426_v42 = vld [vmem:[%s6060_s3 + $0xe8] sm:$0xff]  }
 0x1ce   : > { %4599 = vmatprep.subr.bf16.mxu0 %v5369_v13  ;;  %4621 = vmatprep.subr.bf16.mxu1 %v5371_v23  ;;  %v5428_v13 = vld [vmem:[%s6060_s3 + $0xa8] sm:$0xff]   ;;  %v5430_v23 = vld [vmem:[%s6060_s3 + $0xf0] sm:$0xff]  }
 0x1d1   : > { %4600 = vmatpush3.bf16.msra.mxu0 %v5370_v44  ;;  %4622 = vmatpush3.bf16.msra.mxu1 %v5372_v45  ;;  %v5432_v44 = vld [vmem:[%s6060_s3 + $0xb0] sm:$0xff]   ;;  %v5434_v45 = vld [vmem:[%s6060_s3 + $0xf8] sm:$0xff]  }
 0x1d2   : > { %4601 = vmatprep.subr.bf16.mxu0 %v5373_v46  ;;  %4623 = vmatprep.subr.bf16.mxu1 %v5375_v48  ;;  %v5436_v46 = vld [vmem:[%s6060_s3 + $0xb8] sm:$0xff]   ;;  %v5607_v48 = vmov 0.0  }
 0x1d5   : > { %4602 = vmatpush3.bf16.msra.mxu0 %v5374_v27  ;;  %4624 = vmatpush3.bf16.msra.mxu1 %v5376_v37  ;;  %v2909_v27 = vsub.s32 0, %v5783_v43  ;;  %v2917_v37 = vsub.s32 2, %v5783_v43 }
 0x1d6   : > { %4603 = vmatprep.subr.bf16.mxu0 %v5377_v50  ;;  %4625 = vmatprep.subr.bf16.mxu1 %v5379_v51  ;;  %v742_v50 = vld [vmem:[#allocation5] sm:$0x1f]  ;;  %v2913_v51 = vsub.s32 1, %v5783_v43 }
 0x1d9   : > { %4604 = vmatpush3.bf16.msra.mxu0 %v5378_v54  ;;  %4626 = vmatpush3.bf16.msra.mxu1 %v5380_v55  ;;  %v2921_v54 = vsub.s32 3, %v5783_v43  ;;  %v2910_v55 = vrot.slane %v742_v50, %v2909_v27 }
 0x1da   : > { %4605 = vmatprep.subr.bf16.mxu0 %v5381_v56  ;;  %4627 = vmatprep.subr.bf16.mxu1 %v5383_v57  ;;  %v2918_v56 = vrot.slane %v742_v50, %v2917_v37  ;;  %v2914_v57 = vrot.slane %v742_v50, %v2913_v51 }
 0x1dd   : > { %4606 = vmatpush3.bf16.msra.mxu0 %v5382_v58  ;;  %4628 = vmatpush3.bf16.msra.mxu1 %v5384_v59  ;;  %v2922_v58 = vrot.slane %v742_v50, %v2921_v54 }
 0x1de   : > { %4607 = vmatprep.subr.bf16.mxu0 %v5385_v61  ;;  %4629 = vmatprep.subr.bf16.mxu1 %v5387_v62 }
 0x1e1   : > { %4608 = vmatpush3.bf16.msra.mxu0 %v5386_v63  ;;  %4630 = vmatpush3.bf16.msra.mxu1 %v5388_v1 }
 0x1e2   : > { %4637 = vmatprep.subr.bf16.mxu0 %v5389_v2  ;;  %4659 = vmatprep.subr.bf16.mxu1 %v5405_v3 }
 0x1e4   : > { %3455 = vmatmul.mubr.bf16.vlgmr.msra.gmra.mrb[8].mxu0 %v5834_v33  ;;  %3495 = vmatmul.mubr.bf16.vlgmr.msra.gmra.mrb[8].mxu1 %v5851_v47  ;;  %v5394_v33 = vld [vmem:[#allocation2 + $0xa60] ss:$20 sps:$4 sm:$0xff]   ;;  %v5395_v47 = vld [vmem:[#allocation2 + $0xbc8] ss:$20 sps:$4 sm:$0xff]  }
 0x1e5   : > { %4638 = vmatpush3.bf16.msra.mxu0 %v5390_v4  ;;  %3534 = vmatprep.mubr.bf16.mxu0 %v5854_v53  ;;  %v5415_v53 = vld [vmem:[%s6060_s3 + $0x10] sm:$0xff]  }
 0x1e6   : > { %4639 = vmatprep.subr.bf16.mxu0 %v5391_v5  ;;  %4660 = vmatpush3.bf16.msra.mxu1 %v5407_v6 }
 0x1e7   : > { %4661 = vmatprep.subr.bf16.mxu1 %v5409_v49 }
 0x1e9   : > { %4640 = vmatpush3.bf16.msra.mxu0 %v5392_v16 }
 0x1ea   : > { %4641 = vmatprep.subr.bf16.mxu0 %v5393_v7  ;;  %4662 = vmatpush3.bf16.msra.mxu1 %v5411_v8 }
 0x1eb   : > { %4663 = vmatprep.subr.bf16.mxu1 %v5413_v9 }
 0x1ed   : > { %4642 = vmatpush3.bf16.msra.mxu0 %v5394_v33 }
 0x1ee   : > { %4643 = vmatprep.subr.bf16.mxu0 %v5395_v47  ;;  %4664 = vmatpush3.bf16.msra.mxu1 %v5415_v53 }
 0x1ef   : > { %4665 = vmatprep.subr.bf16.mxu1 %v5417_v10  ;;  %v5437_v10 = vld [vmem:[%s6060_s3 + $0x100] sm:$0xff]  }
 0x1f1   : > { %4644 = vmatpush3.bf16.msra.mxu0 %v5396_v11 }
 0x1f2   : > { %4645 = vmatprep.subr.bf16.mxu0 %v5397_v12  ;;  %4666 = vmatpush3.bf16.msra.mxu1 %v5419_v14  ;;  %v5438_v14 = vld [vmem:[%s6060_s3 + $0x108] sm:$0xff]  }
 0x1f3   : > { %4667 = vmatprep.subr.bf16.mxu1 %v5421_v60  ;;  %v5439_v60 = vld [vmem:[%s6060_s3 + $0x110] sm:$0xff]  }
 0x1f5   : > { %4646 = vmatpush3.bf16.msra.mxu0 %v5398_v17  ;;  %v5440_v17 = vld [vmem:[%s6060_s3 + $0x118] sm:$0xff]  }
 0x1f6   : > { %4647 = vmatprep.subr.bf16.mxu0 %v5399_v15  ;;  %4668 = vmatpush3.bf16.msra.mxu1 %v5423_v18  ;;  %v5441_v15 = vld [vmem:[%s6060_s3 + $0x120] sm:$0xff]   ;;  %v5442_v18 = vld [vmem:[%s6060_s3 + $0x128] sm:$0xff]  }
 0x1f7   : > { %4669 = vmatprep.subr.bf16.mxu1 %v5425_v19  ;;  %v2925_v19 = vsub.s32 4, %v5783_v43  ;;  %v5444_v43 = vld [vmem:[%s6060_s3 + $0x138] sm:$0xff]  }
 0x1f9   : > { %4648 = vmatpush3.bf16.msra.mxu0 %v5400_v20  ;;  %v5443_v20 = vld [vmem:[%s6060_s3 + $0x130] sm:$0xff]  }
 0x1fa   : > { %4649 = vmatprep.subr.bf16.mxu0 %v5401_v21  ;;  %4670 = vmatpush3.bf16.msra.mxu1 %v5427_v52  ;;  %v2926_v52 = vrot.slane %v742_v50, %v2925_v19 }
 0x1fb   : > { %4671 = vmatprep.subr.bf16.mxu1 %v5429_v22 }
 0x1fd   : > { %4650 = vmatpush3.bf16.msra.mxu0 %v5402_v24 }
 0x1fe   : > { %4651 = vmatprep.subr.bf16.mxu0 %v5403_v25  ;;  %4672 = vmatpush3.bf16.msra.mxu1 %v5431_v26 }
 0x1ff   : > { %4673 = vmatprep.subr.bf16.mxu1 %v5433_v28 }
 0x201   : > { %4652 = vmatpush3.bf16.msra.mxu0 %v5404_v29 }
 0x202   : > { %4681 = vmatprep.subr.bf16.mxu0 %v5406_v30  ;;  %4674 = vmatpush3.bf16.msra.mxu1 %v5435_v31 }
 0x203   : > { %4712 = vmatprep.subr.bf16.mxu1 %v5607_v48 }
 0x204   : > { %3535 = vmatmul.mubr.bf16.vlgmr.msra.gmra.mrb[12].mxu0 %v5862_v0  ;;  %v5418_v0 = vld [vmem:[%s6060_s3 + $0xd8] sm:$0xff]  }
 0x205   : > { %4682 = vmatpush3.bf16.msra.mxu0 %v5408_v32 }
 0x206   : > { %4683 = vmatprep.subr.bf16.mxu0 %v5410_v34 }
 0x209   : > { %4684 = vmatpush3.bf16.msra.mxu0 %v5412_v35 }
 0x20a   : > { %4685 = vmatprep.subr.bf16.mxu0 %v5414_v36 }
 0x20d   : > { %4686 = vmatpush3.bf16.msra.mxu0 %v5416_v38 }
 0x20e   : > { %4687 = vmatprep.subr.bf16.mxu0 %v5418_v0 }
 0x211   : > { %4688 = vmatpush3.bf16.msra.mxu0 %v5420_v39 }
 0x212   : > { %4689 = vmatprep.subr.bf16.mxu0 %v5422_v40 }
 0x215   : > { %4690 = vmatpush3.bf16.msra.mxu0 %v5424_v41 }
 0x216   : > { %4691 = vmatprep.subr.bf16.mxu0 %v5426_v42 }
 0x219   : > { %4692 = vmatpush3.bf16.msra.mxu0 %v5428_v13 }
 0x21a   : > { %4693 = vmatprep.subr.bf16.mxu0 %v5430_v23 }
 0x21d   : > { %4694 = vmatpush3.bf16.msra.mxu0 %v5432_v44 }
 0x21e   : > { %4695 = vmatprep.subr.bf16.mxu0 %v5434_v45 }
 0x221   : > { %4696 = vmatpush3.bf16.msra.mxu0 %v5436_v46 }
 0x277   : > { %v3130_v59 = vpop.f32.mrb[0].mxu0  ;;  %v3335_v61 = vpop.f32.mrb[0].mxu1 }
 0x278   : > { %v4732_v62 = vadd.f32 %v3130_v59, %v2910_v55  ;;  %v4734_v63 = vadd.f32 %v3335_v61, %v2918_v56  ;;  %v3132_v1 = vpop.f32.mrb[1].mxu0  ;;  %v3337_v2 = vpop.f32.mrb[1].mxu1  ;;  %v3632_v59 = vld [vmem:[#allocation7] sm:$0x1] }
 0x279   : > { %v4733_v3 = vadd.f32 %v3132_v1, %v2914_v57  ;;  %v4735_v4 = vadd.f32 %v3337_v2, %v2922_v58  ;;  %v3134_v5 = vpop.f32.mrb[2].mxu0  ;;  %v3339_v6 = vpop.f32.mrb[2].mxu1 }
 0x27a   : > { %v3542_v49 = vmax.f32 %v4732_v62, 0.0  ;;  %v3544_v16 = vmax.f32 %v4734_v63, 0.0  ;;  %v3135_v7 = vpop.f32.mrb[3].mxu0  ;;  %v3340_v8 = vpop.f32.mrb[3].mxu1 }
 0x27b   : > { %v3543_v9 = vmax.f32 %v4733_v3, 0.0  ;;  %v3545_v33 = vmax.f32 %v4735_v4, 0.0 }
 0x27c   : > { %v3547_v11 = vpack.c.bf16 %v3542_v49, %v3542_v49  ;;  %v3549_v12 = vpack.c.bf16 %v3544_v16, %v3544_v16 }
 0x27d   : > { %v3548_v47 = vpack.c.bf16 %v3543_v9, %v3543_v9  ;;  %v3550_v53 = vpack.c.bf16 %v3545_v33, %v3545_v33 }
 0x27f   : > { %3905 = vmatprep.mubr.bf16.mxu1 %v3548_v47  ;;  %3945 = vmatprep.mubr.bf16.mxu0 %v3550_v53 }
 0x280   : > { %3906 = vmatmul.mubr.bf16.vlgmr.msra.gmra.mrb[12].mxu1 %v3547_v11  ;;  %3946 = vmatmul.mubr.bf16.vlgmr.msra.gmra.mrb[16].mxu0 %v3549_v12 }
 0x281   : > { %4713 = vmatpush3.bf16.msra.mxu1 %v5437_v10  ;;  %4728 = vmatprep.mubr.msk.bf16.mxu1 %vm5608_vm0, %v5607_v48 }
 0x282   : > { %4714 = vmatprep.subr.bf16.mxu1 %v5607_v48 }
 0x285   : > { %4715 = vmatpush3.bf16.msra.mxu1 %v5438_v14 }
 0x286   : > { %4716 = vmatprep.subr.bf16.mxu1 %v5607_v48 }
 0x289   : > { %4717 = vmatpush3.bf16.msra.mxu1 %v5439_v60 }
 0x28a   : > { %4718 = vmatprep.subr.bf16.mxu1 %v5607_v48 }
 0x28d   : > { %4719 = vmatpush3.bf16.msra.mxu1 %v5440_v17 }
 0x28e   : > { %4720 = vmatprep.subr.bf16.mxu1 %v5607_v48 }
 0x291   : > { %4721 = vmatpush3.bf16.msra.mxu1 %v5441_v15 }
 0x292   : > { %4722 = vmatprep.subr.bf16.mxu1 %v5607_v48 }
 0x295   : > { %4723 = vmatpush3.bf16.msra.mxu1 %v5442_v18 }
 0x296   : > { %4724 = vmatprep.subr.bf16.mxu1 %v5607_v48 }
 0x297   : > { %v4565_v21 = vpop.f32.mrb[4].mxu0  ;;  %v4587_v22 = vpop.f32.mrb[4].mxu1 }
 0x298   : > { %v4566_v24 = vpop.f32.mrb[5].mxu0  ;;  %v4588_v25 = vpop.f32.mrb[5].mxu1 }
 0x299   : > { %v4567_v26 = vadd.f32 %v4566_v24, %v4565_v21  ;;  %v4568_v28 = vpop.f32.mrb[6].mxu0  ;;  %v4589_v29 = vadd.f32 %v4588_v25, %v4587_v22  ;;  %v4590_v30 = vpop.f32.mrb[6].mxu1  ;;  %4725 = vmatpush3.bf16.msra.mxu1 %v5443_v20 }
 0x29a   : > { %v4569_v31 = vpop.f32.mrb[7].mxu0  ;;  %v4591_v32 = vpop.f32.mrb[7].mxu1  ;;  %4726 = vmatprep.subr.bf16.mxu1 %v5607_v48 }
 0x29b   : > { %v3377_v34 = vadd.f32 %v4567_v26, %v2926_v52 }
 0x29d   : > { %v3417_v35 = vadd.f32 %v4589_v29, %v3377_v34  ;;  %4727 = vmatpush3.bf16.msra.mxu1 %v5444_v43 }
 0x2b7   : > { %v4609_v36 = vpop.f32.mrb[8].mxu0  ;;  %v4631_v38 = vpop.f32.mrb[8].mxu1 }
 0x2b8   : > { %v4610_v0 = vpop.f32.mrb[9].mxu0  ;;  %v4632_v39 = vpop.f32.mrb[9].mxu1 }
 0x2b9   : > { %v4611_v40 = vadd.f32 %v4610_v0, %v4609_v36  ;;  %v4612_v41 = vpop.f32.mrb[10].mxu0  ;;  %v4633_v42 = vadd.f32 %v4632_v39, %v4631_v38  ;;  %v4634_v13 = vpop.f32.mrb[10].mxu1 }
 0x2ba   : > { %v4613_v23 = vpop.f32.mrb[11].mxu0  ;;  %v4635_v44 = vpop.f32.mrb[11].mxu1 }
 0x2bb   : > { %v3457_v45 = vadd.f32 %v4611_v40, %v3417_v35 }
 0x2bd   : > { %v3497_v46 = vadd.f32 %v4633_v42, %v3457_v45 }
 0x2d7   : > { %v4653_v27 = vpop.f32.mrb[12].mxu0 }
 0x2d8   : > { %v4654_v37 = vpop.f32.mrb[13].mxu0 }
 0x2d9   : > { %v4655_v50 = vadd.f32 %v4654_v37, %v4653_v27  ;;  %v4656_v51 = vpop.f32.mrb[14].mxu0 }
 0x2da   : > { %v4657_v48 = vpop.f32.mrb[15].mxu0 }
 0x2db   : > { %v3537_v54 = vadd.f32 %v4655_v50, %v3497_v46 }
 0x2dd   : > { %v3546_v55 = vmax.f32 %v3537_v54, 0.0 }
 0x2df   : > { %v3551_v56 = vpack.c.bf16 %v3546_v55, %v3546_v55 }
 0x2e1   : > { %4729 = vmatmul.mubr.bf16.vlgmr.msra.gmra.mrb[16].mxu1 %v3551_v56 }
 0x353   : > { %v4675_v57 = vpop.f32.mrb[12].mxu1  ;;  %v4697_v58 = vpop.f32.mrb[16].mxu0 }
 0x354   : > { %v4676_v61 = vpop.f32.mrb[13].mxu1  ;;  %v4698_v62 = vpop.f32.mrb[17].mxu0 }
 0x355   : > { %v4677_v63 = vadd.f32 %v4676_v61, %v4675_v57  ;;  %v4699_v1 = vadd.f32 %v4698_v62, %v4697_v58  ;;  %v4678_v2 = vpop.f32.mrb[14].mxu1  ;;  %v4700_v3 = vpop.f32.mrb[18].mxu0 }
 0x356   : > { %v4679_v4 = vpop.f32.mrb[15].mxu1  ;;  %v4701_v5 = vpop.f32.mrb[19].mxu0 }
 0x357   : > { %v3908_v6 = vadd.f32 %v4677_v63, %v3632_v59 }
 0x359   : > { %v3948_v49 = vadd.f32 %v4699_v1, %v3908_v6 }
 0x3b4   : > { %v3987_v16 = vpop.f32.mrb[16].mxu1 }
 0x3b5   : > { %v3988_v7 = vadd.f32 %v3987_v16, %v3948_v49  ;;  %v4730_v8 = vpop.f32.mrb[17].mxu1 }
 0x3b6   : > { %v3990_v9 = vpop.f32.mrb[18].mxu1 }
 0x3b7   : > { %v3993_v33 = vmax.f32 %v3988_v7, 0.0  ;;  %v4731_v47 = vpop.f32.mrb[19].mxu1 }
 0x3b9   : > { %3995 = vst.msk [vmem:[%s254_s17] sm:$0x1] %vm3994_vm1, %v3993_v33 }
 0x3ba   : > { %5542 = shalt.err (!%p5539_p11)
}
 0x3bb   : > { %s5543_s30 = scalar_lea.hbm %s6015_s7, 16  ;;  %s5547_s23 = scalar_lea.hbm %s6062_s5, 32 }
 0x3bc   : > { %p5544_p13 = scmp.ne.s32.totalorder %s6015_s7, %s5543_s30  ;;  %p5548_p6 = scmp.lt.u32.totalorder %s6015_s7, %s6062_s5 }
 0x3bd   : > { %p5549_p5 = scmp.lt.u32.totalorder %s5547_s23, %s5543_s30  ;;  %p5551_p9 = scmp.lt.u32.totalorder %s5543_s30, %s6015_s7 }
 0x3be   : > { %p5545_p1 = pnand %p5544_p13, %p6076_p10 }
 0x3bf   : > { %p5550_p12 = por %p5549_p5, %p5548_p6 }
 0x3c0   : > { %p5546_p0 = pneg %p5545_p1 }
 0x3c1   : > { %p5552_p2 = por %p5551_p9, %p5550_p12 }
 0x3c3   : > { %p5553_p3 = pnand %p5552_p2, %p5546_p0 }
 0x3c5   : > { %5556 = shalt.err (!%p5553_p3)
}
 0x3c6   : > { %4781 = dma.vmem_to_hbm [thread:$0]  (%p6076_p10), %s6017_s25, 16, %s6015_s7, %s3997_s22  }
 0x3c7 PF: > { %p4803_p4 = scmp.ge.s32.totalorder %s5599_s21, 2  ;;  %s4021_s16 = sand.u32 1, %s5587_s18  }
 0x3c8   : > { %p6077_p7 = scmp.ne.s32.totalorder %s6067_s29, 0  ;;  %s4022_s17 = scalar_lea.sflag [#allocation4], %s4021_s16 }
 0x3ca   : > { %p4794_p8 = pnand %p4803_p4, %p6077_p7 }
 0x3cc   : > { %5582 = dma.done.wait (!%p4794_p8), %s4022_s17, 16  }
 0x3cd   : > { %5584 = vsyncadd (!%p4794_p8), %s4022_s17, 4294967280  ;;  %p17_p11 = scmp.ge.s32.totalorder %s5665_s24, 4   ;;  %s6078_s18 = smov %s5591_s19 }
 0x3ce   : > { %s6079_s19 = smov %s5595_s20  ;;  %s6080_s20 = smov %s5676_s27 }
 0x3cf   : > { %s6081_s21 = smov %s5665_s24  ;;  %19 = sbr.rel (!%p17_p11) target bundleno = 5 (0x5), region = 88 }
 0x3d6   :  { %4026 = vsyncpa [#allocation3], 1 }
 0x3d7   :  { %4028 = vsyncpa [#allocation3 + $0x1], 1 }
 0x3d8   :  { %4029 = vsyncpa [#allocation6], 1 }
 0x3d9   :  { %4030 = vsyncpa [#allocation4], 1 }
 0x3da   :  { %4032 = vsyncpa [#allocation4 + $0x1], 1 }

</bundles_post_ra>
